<compile_context>
chip_gen: v7x
topology: tpu7x:2x2x1
jax: 0.10.0
libtpu: 0.0.40
codegen_flags: <defaults>
</compile_context>

<pallas_src>
import math
import functools

import jax
import jax.numpy as jnp
from jax.experimental import pallas as pl
from jax.experimental.pallas import tpu as pltpu


# ----------------------------- helpers ---------------------------------------

def _pick_tile(dim, target):
    """Largest divisor of `dim` that is <= target (prefers `target` itself)."""
    t = min(dim, target)
    while dim % t != 0:
        t //= 2
    return max(t, 1)


# ----------------------------- linear kernel ----------------------------------

def linear_kernel(x_ref, w_ref, o_ref, acc_ref):
    # x block: (tm, tk); w block: (tn, tk) in torch nn.Linear layout (out, in).
    # Contract directly on the shared K axis (x @ w.T) -- no host-side transpose.
    @pl.when(pl.program_id(2) == 0)
    def _():
        acc_ref[...] = jnp.zeros(acc_ref.shape, acc_ref.dtype)

    acc_ref[...] += jax.lax.dot_general(
        x_ref[...], w_ref[...],
        dimension_numbers=(((1,), (1,)), ((), ())),
        preferred_element_type=jnp.float32,
    )

    @pl.when(pl.program_id(2) == pl.num_programs(2) - 1)
    def _():
        o_ref[...] = acc_ref[...].astype(o_ref.dtype)


def linear(x2d, w, *, tm=256, tn=256, tk=512):
    """x2d: (M, K); w: (N, K) torch nn.Linear layout. Returns x2d @ w.T : (M, N)."""
    M, K = x2d.shape
    N, K2 = w.shape
    assert K == K2
    tm = _pick_tile(M, tm)
    tn = _pick_tile(N, tn)
    tk = _pick_tile(K, tk)
    grid = (M // tm, N // tn, K // tk)
    return pl.pallas_call(
        linear_kernel,
        out_shape=jax.ShapeDtypeStruct((M, N), x2d.dtype),
        grid=grid,
        in_specs=[
            pl.BlockSpec((tm, tk), lambda i, j, k: (i, k)),
            pl.BlockSpec((tn, tk), lambda i, j, k: (j, k)),
        ],
        out_specs=pl.BlockSpec((tm, tn), lambda i, j, k: (i, j)),
        scratch_shapes=[pltpu.VMEM((tm, tn), jnp.float32)],
        compiler_params=pltpu.CompilerParams(
            dimension_semantics=("parallel", "parallel", "arbitrary")
        ),
    )(x2d, w)


# ----------------------------- attention kernel --------------------------------

def attn_kernel(q_ref, k_ref, v_ref, cq_ref, sq_ref, ck_ref, sk_ref, mask_ref,
                o_ref, m_sc, l_sc, acc_sc, *, half):
    ki = pl.program_id(3)

    @pl.when(ki == 0)
    def _():
        m_sc[...] = jnp.full(m_sc.shape, -jnp.inf, m_sc.dtype)
        l_sc[...] = jnp.zeros(l_sc.shape, l_sc.dtype)
        acc_sc[...] = jnp.zeros(acc_sc.shape, acc_sc.dtype)

    def rope(x, cos, sin_signed):
        # rotate_half(x) * sin == concat(x2, x1) * sin_signed (sign folded in wrapper),
        # so RoPE is two FMAs plus one lane rotation -- no iota / where / negate.
        rot = jnp.concatenate([x[:, half:], x[:, :half]], axis=-1)
        return (x * cos + rot * sin_signed).astype(x.dtype)

    q = rope(q_ref[0], cq_ref[0], sq_ref[0])   # 1/sqrt(D) is pre-folded into cq/sq
    k = rope(k_ref[0], ck_ref[0], sk_ref[0])
    v = v_ref[0]

    # Scores stay in f32 through mask add + softmax (no f32<->bf16 round trip).
    s = jax.lax.dot_general(q, k, (((1,), (1,)), ((), ())),
                            preferred_element_type=jnp.float32)
    s = s + mask_ref[...]

    # Online (flash-style) softmax over KV tiles.
    m_prev = m_sc[...]
    m_new = jnp.maximum(m_prev, jnp.max(s, axis=-1, keepdims=True))
    alpha = jnp.exp(m_prev - m_new)
    p = jnp.exp(s - m_new)
    l_sc[...] = alpha * l_sc[...] + jnp.sum(p, axis=-1, keepdims=True)
    acc_sc[...] = alpha * acc_sc[...] + jnp.dot(
        p.astype(v.dtype), v, preferred_element_type=jnp.float32)
    m_sc[...] = m_new

    @pl.when(ki == pl.num_programs(3) - 1)
    def _():
        # Normalize by multiplying the tiny (tq, 1) reciprocal into the f32
        # accumulator -- no wide (tq, tk) divide ever touches the VALU.
        o_ref[0] = (acc_sc[...] * (1.0 / l_sc[...])).astype(o_ref.dtype)


def attention(qkv, cos_q, sin_q, cos_k, sin_k, mask2d, num_heads, *, tq=256, tkv=256):
    """qkv: (B, S, 3H) fused projection; cos/sin: (B, S, D); mask2d: (S, S) f32.

    Returns attention output directly in (B, S, H) layout (head h occupies
    columns h*D:(h+1)*D), ready for the o_proj matmul with no transpose."""
    B, S, H3 = qkv.shape
    H = H3 // 3
    NH = num_heads
    D = H // NH
    tq = _pick_tile(S, tq)
    tkv = _pick_tile(S, tkv)
    grid = (B, NH, S // tq, S // tkv)
    kern = functools.partial(attn_kernel, half=D // 2)
    return pl.pallas_call(
        kern,
        out_shape=jax.ShapeDtypeStruct((B, S, H), qkv.dtype),
        grid=grid,
        in_specs=[
            # q / k / v are column slices of the same fused (B, S, 3H) tensor.
            pl.BlockSpec((1, tq, D), lambda b, h, qi, ki: (b, qi, h)),
            pl.BlockSpec((1, tkv, D), lambda b, h, qi, ki: (b, ki, NH + h)),
            pl.BlockSpec((1, tkv, D), lambda b, h, qi, ki: (b, ki, 2 * NH + h)),
            # RoPE tables: q-side (scaled) indexed by qi, k-side indexed by ki.
            pl.BlockSpec((1, tq, D), lambda b, h, qi, ki: (b, qi, 0)),
            pl.BlockSpec((1, tq, D), lambda b, h, qi, ki: (b, qi, 0)),
            pl.BlockSpec((1, tkv, D), lambda b, h, qi, ki: (b, ki, 0)),
            pl.BlockSpec((1, tkv, D), lambda b, h, qi, ki: (b, ki, 0)),
            # Additive mask tile (f32).
            pl.BlockSpec((tq, tkv), lambda b, h, qi, ki: (qi, ki)),
        ],
        out_specs=pl.BlockSpec((1, tq, D), lambda b, h, qi, ki: (b, qi, h)),
        scratch_shapes=[
            pltpu.VMEM((tq, 1), jnp.float32),   # running max
            pltpu.VMEM((tq, 1), jnp.float32),   # running sum
            pltpu.VMEM((tq, D), jnp.float32),   # output accumulator
        ],
        compiler_params=pltpu.CompilerParams(
            dimension_semantics=("parallel", "parallel", "parallel", "arbitrary")
        ),
    )(qkv, qkv, qkv, cos_q, sin_q, cos_k, sin_k, mask2d)


# ------------------------------- glue (JAX) ---------------------------------

def rope_cos_sin(position_ids, dim, base=10000.0):
    """Matches LlamaRotaryEmbedding.forward; returns f32 cos/sin of shape (B, S, dim)."""
    inv_freq = 1.0 / (base ** (jnp.arange(0, dim, 2, dtype=jnp.float32) / dim))
    freqs = position_ids.astype(jnp.float32)[:, :, None] * inv_freq[None, None, :]
    emb = jnp.concatenate([freqs, freqs], axis=-1)
    return jnp.cos(emb), jnp.sin(emb)


@functools.partial(jax.jit, static_argnums=(7,))
def llama_attention_forward(hidden_states, position_ids, causal_mask,
                            wq, wk, wv, wo, num_heads):
    B, S, H = hidden_states.shape
    D = H // num_heads
    half = D // 2
    dtype = hidden_states.dtype

    # Fused QKV projection: one (3H, H) weight, one tiled pallas_call.
    x2d = hidden_states.reshape(B * S, H)
    wqkv = jnp.concatenate([wq, wk, wv], axis=0)           # (3H, H)
    qkv = linear(x2d, wqkv).reshape(B, S, 3 * H)

    # Sign-fold rotate_half into sin (first half negated) and fold the 1/sqrt(D)
    # attention scale into the q-side cos/sin so the kernel does no extra scaling.
    cos32, sin32 = rope_cos_sin(position_ids, D)
    sin_signed32 = jnp.concatenate([-sin32[..., :half], sin32[..., half:]], axis=-1)
    scale = 1.0 / math.sqrt(D)
    cos_q = (cos32 * scale).astype(dtype)
    sin_q = (sin_signed32 * scale).astype(dtype)
    cos_k = cos32.astype(dtype)
    sin_k = sin_signed32.astype(dtype)

    mask2d = causal_mask[0, 0].astype(jnp.float32)          # added to f32 scores

    # Attention writes directly in (B, S, H) layout -> no transposes anywhere.
    attn_out = attention(qkv, cos_q, sin_q, cos_k, sin_k, mask2d, num_heads)
    return linear(attn_out.reshape(B * S, H), wo).reshape(B, S, H)


def llama_attention_reference(hidden_states, position_ids, causal_mask,
                              wq, wk, wv, wo, num_heads):
    """Pure-JAX reference mirroring the torch forward (training=False)."""
    B, S, H = hidden_states.shape
    D = H // num_heads
    dtype = hidden_states.dtype

    def lin(x, w):
        return jnp.dot(x, w.T, preferred_element_type=jnp.float32).astype(dtype)

    q = lin(hidden_states, wq).reshape(B, S, num_heads, D).transpose(0, 2, 1, 3)
    k = lin(hidden_states, wk).reshape(B, S, num_heads, D).transpose(0, 2, 1, 3)
    v = lin(hidden_states, wv).reshape(B, S, num_heads, D).transpose(0, 2, 1, 3)

    cos32, sin32 = rope_cos_sin(position_ids, D)
    cos = cos32.astype(dtype)[:, None]   # unsqueeze_dim=1
    sin = sin32.astype(dtype)[:, None]

    def rot_half(x):
        return jnp.concatenate([-x[..., D // 2:], x[..., :D // 2]], axis=-1)

    q = (q * cos + rot_half(q) * sin).astype(dtype)
    k = (k * cos + rot_half(k) * sin).astype(dtype)

    scores = jnp.einsum("bhqd,bhkd->bhqk", q, k,
                        preferred_element_type=jnp.float32).astype(dtype)
    scores = scores / jnp.asarray(math.sqrt(D), dtype) + causal_mask
    p = jax.nn.softmax(scores.astype(jnp.float32), axis=-1).astype(dtype)
    out = jnp.einsum("bhqk,bhkd->bhqd", p, v,
                     preferred_element_type=jnp.float32).astype(dtype)
    out = out.transpose(0, 2, 1, 3).reshape(B, S, H)
    return lin(out, wo)


# --------------------------------- main --------------------------------------

if __name__ == "__main__":
    # Small config: hidden_size=512, num_heads=4 -> head_dim=128 (lane-aligned).
    B, S, H, NH = 2, 8, 512, 4
    dtype = jnp.bfloat16

    key = jax.random.PRNGKey(0)
    kx, kq, kk, kv, ko = jax.random.split(key, 5)

    hidden_states = jax.random.normal(kx, (B, S, H), jnp.float32).astype(dtype)
    wq = (0.02 * jax.random.normal(kq, (H, H), jnp.float32)).astype(dtype)
    wk = (0.02 * jax.random.normal(kk, (H, H), jnp.float32)).astype(dtype)
    wv = (0.02 * jax.random.normal(kv, (H, H), jnp.float32)).astype(dtype)
    wo = (0.02 * jax.random.normal(ko, (H, H), jnp.float32)).astype(dtype)

    position_ids = jnp.broadcast_to(jnp.arange(S, dtype=jnp.int32), (B, S))

    neg = jnp.finfo(dtype).min
    tri = jnp.tril(jnp.ones((S, S), dtype=bool))
    causal_mask = jnp.where(tri, jnp.asarray(0.0, dtype), jnp.asarray(neg, dtype))
    causal_mask = causal_mask[None, None]  # (1, 1, S, S)

    out = llama_attention_forward(hidden_states, position_ids, causal_mask,
                                  wq, wk, wv, wo, NH)
    out = jax.block_until_ready(out)

    ref = llama_attention_reference(hidden_states, position_ids, causal_mask,
                                    wq, wk, wv, wo, NH)
    err = jnp.max(jnp.abs(out.astype(jnp.float32) - ref.astype(jnp.float32)))
    assert out.shape == (B, S, H) and out.dtype == dtype
    assert float(err) < 5e-2, f"mismatch vs reference, max abs err = {float(err)}"

    print("KERNEL_OK")
</pallas_src>

<mosaic_0001>
module attributes {stable_mosaic.version = 11 : i64} {
  func.func @linear_kernel(%arg0: i32, %arg1: i32, %arg2: i32, %arg3: memref<16x512xbf16, #tpu.memory_space<vmem>>, %arg4: memref<256x512xbf16, #tpu.memory_space<vmem>>, %arg5: memref<16x256xbf16, #tpu.memory_space<vmem>>, %arg6: memref<16x256xf32, #tpu.memory_space<vmem>>) attributes {dimension_semantics = [#tpu.dimension_semantics<parallel>, #tpu.dimension_semantics<parallel>, #tpu.dimension_semantics<arbitrary>], iteration_bounds = array<i64: 1, 6, 1>, scalar_prefetch = 0 : i64, scratch_operands = 1 : i64, tpu.core_type = #tpu.core_type<tc>, window_params = [{transform_indices = @transform_0, window_bounds = array<i64: 16, 512>}, {transform_indices = @transform_1, window_bounds = array<i64: 256, 512>}, {transform_indices = @transform_2, window_bounds = array<i64: 16, 256>}]} {
    %c0_i32 = arith.constant 0 : i32
    %0 = arith.cmpi eq, %arg2, %c0_i32 : i32
    %1 = arith.extui %0 : i1 to i32
    %c0_i32_0 = arith.constant 0 : i32
    %2 = arith.cmpi ne, %1, %c0_i32_0 : i32
    scf.if %2 {
      %cst_10 = arith.constant 0.000000e+00 : f32
      %12 = vector.broadcast %cst_10 : f32 to vector<16x256xf32>
      %c0_11 = arith.constant 0 : index
      %c0_12 = arith.constant 0 : index
      %13 = vector.load %arg6[%c0_11, %c0_12] : memref<16x256xf32, #tpu.memory_space<vmem>>, vector<16x256xf32>
      tpu.vector_store %arg6[%c0_11, %c0_12], %12 {strides = array<i32>} : memref<16x256xf32, #tpu.memory_space<vmem>>, vector<16x256xf32>,
    } else {
    }
    %c0 = arith.constant 0 : index
    %c0_1 = arith.constant 0 : index
    %3 = vector.load %arg6[%c0, %c0_1] : memref<16x256xf32, #tpu.memory_space<vmem>>, vector<16x256xf32>
    %c0_2 = arith.constant 0 : index
    %c0_3 = arith.constant 0 : index
    %4 = vector.load %arg3[%c0_2, %c0_3] : memref<16x512xbf16, #tpu.memory_space<vmem>>, vector<16x512xbf16>
    %c0_4 = arith.constant 0 : index
    %c0_5 = arith.constant 0 : index
    %5 = vector.load %arg4[%c0_4, %c0_5] : memref<256x512xbf16, #tpu.memory_space<vmem>>, vector<256x512xbf16>
    %cst = arith.constant dense<0.000000e+00> : vector<16x256xf32>
    %6 = tpu.matmul %4, %5, %cst {dimension_numbers = #tpu.dot_dimension_numbers<[1], [1], [0], [0], [0, 0, 1, 0], [], []>} : vector<16x512xbf16>, vector<256x512xbf16>, vector<16x256xf32> -> vector<16x256xf32>
    %7 = arith.addf %3, %6 : vector<16x256xf32>
    %c0_6 = arith.constant 0 : index
    %c0_7 = arith.constant 0 : index
    %8 = vector.load %arg6[%c0_6, %c0_7] : memref<16x256xf32, #tpu.memory_space<vmem>>, vector<16x256xf32>
    tpu.vector_store %arg6[%c0_6, %c0_7], %7 {strides = array<i32>} : memref<16x256xf32, #tpu.memory_space<vmem>>, vector<16x256xf32>,
    %c0_i32_8 = arith.constant 0 : i32
    %9 = arith.cmpi eq, %arg2, %c0_i32_8 : i32
    %10 = arith.extui %9 : i1 to i32
    %c0_i32_9 = arith.constant 0 : i32
    %11 = arith.cmpi ne, %10, %c0_i32_9 : i32
    scf.if %11 {
      %c0_10 = arith.constant 0 : index
      %c0_11 = arith.constant 0 : index
      %12 = vector.load %arg6[%c0_10, %c0_11] : memref<16x256xf32, #tpu.memory_space<vmem>>, vector<16x256xf32>
      %13 = arith.truncf %12 : vector<16x256xf32> to vector<16x256xbf16>
      %c0_12 = arith.constant 0 : index
      %c0_13 = arith.constant 0 : index
      %14 = vector.load %arg5[%c0_12, %c0_13] : memref<16x256xbf16, #tpu.memory_space<vmem>>, vector<16x256xbf16>
      tpu.vector_store %arg5[%c0_12, %c0_13], %13 {strides = array<i32>} : memref<16x256xbf16, #tpu.memory_space<vmem>>, vector<16x256xbf16>,
    } else {
    }
    return
  }
  func.func @transform_0(%arg0: i32, %arg1: i32, %arg2: i32) -> (i32, i32) {
    %c0_i32 = arith.constant 0 : i32
    return %arg0, %arg2 : i32, i32
  }
  func.func @transform_1(%arg0: i32, %arg1: i32, %arg2: i32) -> (i32, i32) {
    %c0_i32 = arith.constant 0 : i32
    return %arg1, %arg2 : i32, i32
  }
  func.func @transform_2(%arg0: i32, %arg1: i32, %arg2: i32) -> (i32, i32) {
    %c0_i32 = arith.constant 0 : i32
    return %arg0, %arg1 : i32, i32
  }
}

module attributes {stable_mosaic.version = 11 : i64} {
  func.func @linear_kernel(%arg0: i32, %arg1: i32, %arg2: i32, %arg3: memref<16x512xbf16, #tpu.memory_space<vmem>>, %arg4: memref<256x512xbf16, #tpu.memory_space<vmem>>, %arg5: memref<16x256xbf16, #tpu.memory_space<vmem>>, %arg6: memref<16x256xf32, #tpu.memory_space<vmem>>) attributes {dimension_semantics = [#tpu.dimension_semantics<parallel>, #tpu.dimension_semantics<parallel>, #tpu.dimension_semantics<arbitrary>], iteration_bounds = array<i64: 1, 2, 1>, scalar_prefetch = 0 : i64, scratch_operands = 1 : i64, tpu.core_type = #tpu.core_type<tc>, window_params = [{transform_indices = @transform_0, window_bounds = array<i64: 16, 512>}, {transform_indices = @transform_1, window_bounds = array<i64: 256, 512>}, {transform_indices = @transform_2, window_bounds = array<i64: 16, 256>}]} {
    %c0_i32 = arith.constant 0 : i32
    %0 = arith.cmpi eq, %arg2, %c0_i32 : i32
    %1 = arith.extui %0 : i1 to i32
    %c0_i32_0 = arith.constant 0 : i32
    %2 = arith.cmpi ne, %1, %c0_i32_0 : i32
    scf.if %2 {
      %cst_10 = arith.constant 0.000000e+00 : f32
      %12 = vector.broadcast %cst_10 : f32 to vector<16x256xf32>
      %c0_11 = arith.constant 0 : index
      %c0_12 = arith.constant 0 : index
      %13 = vector.load %arg6[%c0_11, %c0_12] : memref<16x256xf32, #tpu.memory_space<vmem>>, vector<16x256xf32>
      tpu.vector_store %arg6[%c0_11, %c0_12], %12 {strides = array<i32>} : memref<16x256xf32, #tpu.memory_space<vmem>>, vector<16x256xf32>,
    } else {
    }
    %c0 = arith.constant 0 : index
    %c0_1 = arith.constant 0 : index
    %3 = vector.load %arg6[%c0, %c0_1] : memref<16x256xf32, #tpu.memory_space<vmem>>, vector<16x256xf32>
    %c0_2 = arith.constant 0 : index
    %c0_3 = arith.constant 0 : index
    %4 = vector.load %arg3[%c0_2, %c0_3] : memref<16x512xbf16, #tpu.memory_space<vmem>>, vector<16x512xbf16>
    %c0_4 = arith.constant 0 : index
    %c0_5 = arith.constant 0 : index
    %5 = vector.load %arg4[%c0_4, %c0_5] : memref<256x512xbf16, #tpu.memory_space<vmem>>, vector<256x512xbf16>
    %cst = arith.constant dense<0.000000e+00> : vector<16x256xf32>
    %6 = tpu.matmul %4, %5, %cst {dimension_numbers = #tpu.dot_dimension_numbers<[1], [1], [0], [0], [0, 0, 1, 0], [], []>} : vector<16x512xbf16>, vector<256x512xbf16>, vector<16x256xf32> -> vector<16x256xf32>
    %7 = arith.addf %3, %6 : vector<16x256xf32>
    %c0_6 = arith.constant 0 : index
    %c0_7 = arith.constant 0 : index
    %8 = vector.load %arg6[%c0_6, %c0_7] : memref<16x256xf32, #tpu.memory_space<vmem>>, vector<16x256xf32>
    tpu.vector_store %arg6[%c0_6, %c0_7], %7 {strides = array<i32>} : memref<16x256xf32, #tpu.memory_space<vmem>>, vector<16x256xf32>,
    %c0_i32_8 = arith.constant 0 : i32
    %9 = arith.cmpi eq, %arg2, %c0_i32_8 : i32
    %10 = arith.extui %9 : i1 to i32
    %c0_i32_9 = arith.constant 0 : i32
    %11 = arith.cmpi ne, %10, %c0_i32_9 : i32
    scf.if %11 {
      %c0_10 = arith.constant 0 : index
      %c0_11 = arith.constant 0 : index
      %12 = vector.load %arg6[%c0_10, %c0_11] : memref<16x256xf32, #tpu.memory_space<vmem>>, vector<16x256xf32>
      %13 = arith.truncf %12 : vector<16x256xf32> to vector<16x256xbf16>
      %c0_12 = arith.constant 0 : index
      %c0_13 = arith.constant 0 : index
      %14 = vector.load %arg5[%c0_12, %c0_13] : memref<16x256xbf16, #tpu.memory_space<vmem>>, vector<16x256xbf16>
      tpu.vector_store %arg5[%c0_12, %c0_13], %13 {strides = array<i32>} : memref<16x256xbf16, #tpu.memory_space<vmem>>, vector<16x256xbf16>,
    } else {
    }
    return
  }
  func.func @transform_0(%arg0: i32, %arg1: i32, %arg2: i32) -> (i32, i32) {
    %c0_i32 = arith.constant 0 : i32
    return %arg0, %arg2 : i32, i32
  }
  func.func @transform_1(%arg0: i32, %arg1: i32, %arg2: i32) -> (i32, i32) {
    %c0_i32 = arith.constant 0 : i32
    return %arg1, %arg2 : i32, i32
  }
  func.func @transform_2(%arg0: i32, %arg1: i32, %arg2: i32) -> (i32, i32) {
    %c0_i32 = arith.constant 0 : i32
    return %arg0, %arg1 : i32, i32
  }
}

module attributes {stable_mosaic.version = 11 : i64} {
  func.func @attn_kernel(%arg0: i32, %arg1: i32, %arg2: i32, %arg3: i32, %arg4: memref<1x8x128xbf16, #tpu.memory_space<vmem>>, %arg5: memref<1x8x128xbf16, #tpu.memory_space<vmem>>, %arg6: memref<1x8x128xbf16, #tpu.memory_space<vmem>>, %arg7: memref<1x8x128xbf16, #tpu.memory_space<vmem>>, %arg8: memref<1x8x128xbf16, #tpu.memory_space<vmem>>, %arg9: memref<1x8x128xbf16, #tpu.memory_space<vmem>>, %arg10: memref<1x8x128xbf16, #tpu.memory_space<vmem>>, %arg11: memref<8x8xf32, #tpu.memory_space<vmem>>, %arg12: memref<1x8x128xbf16, #tpu.memory_space<vmem>>, %arg13: memref<8x1xf32, #tpu.memory_space<vmem>>, %arg14: memref<8x1xf32, #tpu.memory_space<vmem>>, %arg15: memref<8x128xf32, #tpu.memory_space<vmem>>) attributes {dimension_semantics = [#tpu.dimension_semantics<parallel>, #tpu.dimension_semantics<parallel>, #tpu.dimension_semantics<parallel>, #tpu.dimension_semantics<arbitrary>], iteration_bounds = array<i64: 2, 4, 1, 1>, scalar_prefetch = 0 : i64, scratch_operands = 3 : i64, tpu.core_type = #tpu.core_type<tc>, window_params = [{transform_indices = @transform_0, window_bounds = array<i64: 1, 8, 128>}, {transform_indices = @transform_1, window_bounds = array<i64: 1, 8, 128>}, {transform_indices = @transform_2, window_bounds = array<i64: 1, 8, 128>}, {transform_indices = @transform_3, window_bounds = array<i64: 1, 8, 128>}, {transform_indices = @transform_4, window_bounds = array<i64: 1, 8, 128>}, {transform_indices = @transform_5, window_bounds = array<i64: 1, 8, 128>}, {transform_indices = @transform_6, window_bounds = array<i64: 1, 8, 128>}, {transform_indices = @transform_7, window_bounds = array<i64: 8, 8>}, {transform_indices = @transform_8, window_bounds = array<i64: 1, 8, 128>}]} {
    %c0_i32 = arith.constant 0 : i32
    %0 = arith.cmpi eq, %arg3, %c0_i32 : i32
    %1 = arith.extui %0 : i1 to i32
    %c0_i32_0 = arith.constant 0 : i32
    %2 = arith.cmpi ne, %1, %c0_i32_0 : i32
    scf.if %2 {
      %cst_40 = arith.constant 0xFF800000 : f32
      %58 = vector.broadcast %cst_40 : f32 to vector<8x1xf32>
      %c0_41 = arith.constant 0 : index
      %c0_42 = arith.constant 0 : index
      %59 = vector.load %arg13[%c0_41, %c0_42] : memref<8x1xf32, #tpu.memory_space<vmem>>, vector<8x1xf32>
      tpu.vector_store %arg13[%c0_41, %c0_42], %58 {strides = array<i32>} : memref<8x1xf32, #tpu.memory_space<vmem>>, vector<8x1xf32>,
      %cst_43 = arith.constant 0.000000e+00 : f32
      %60 = vector.broadcast %cst_43 : f32 to vector<8x1xf32>
      %c0_44 = arith.constant 0 : index
      %c0_45 = arith.constant 0 : index
      %61 = vector.load %arg14[%c0_44, %c0_45] : memref<8x1xf32, #tpu.memory_space<vmem>>, vector<8x1xf32>
      tpu.vector_store %arg14[%c0_44, %c0_45], %60 {strides = array<i32>} : memref<8x1xf32, #tpu.memory_space<vmem>>, vector<8x1xf32>,
      %cst_46 = arith.constant 0.000000e+00 : f32
      %62 = vector.broadcast %cst_46 : f32 to vector<8x128xf32>
      %c0_47 = arith.constant 0 : index
      %c0_48 = arith.constant 0 : index
      %63 = vector.load %arg15[%c0_47, %c0_48] : memref<8x128xf32, #tpu.memory_space<vmem>>, vector<8x128xf32>
      tpu.vector_store %arg15[%c0_47, %c0_48], %62 {strides = array<i32>} : memref<8x128xf32, #tpu.memory_space<vmem>>, vector<8x128xf32>,
    } else {
    }
    %c0 = arith.constant 0 : index
    %c0_1 = arith.constant 0 : index
    %c0_2 = arith.constant 0 : index
    %3 = vector.load %arg4[%c0, %c0_1, %c0_2] : memref<1x8x128xbf16, #tpu.memory_space<vmem>>, vector<1x8x128xbf16>
    %4 = vector.shape_cast %3 : vector<1x8x128xbf16> to vector<8x128xbf16>
    %c0_3 = arith.constant 0 : index
    %c0_4 = arith.constant 0 : index
    %c0_5 = arith.constant 0 : index
    %5 = vector.load %arg7[%c0_3, %c0_4, %c0_5] : memref<1x8x128xbf16, #tpu.memory_space<vmem>>, vector<1x8x128xbf16>
    %6 = vector.shape_cast %5 : vector<1x8x128xbf16> to vector<8x128xbf16>
    %c0_6 = arith.constant 0 : index
    %c0_7 = arith.constant 0 : index
    %c0_8 = arith.constant 0 : index
    %7 = vector.load %arg8[%c0_6, %c0_7, %c0_8] : memref<1x8x128xbf16, #tpu.memory_space<vmem>>, vector<1x8x128xbf16>
    %8 = vector.shape_cast %7 : vector<1x8x128xbf16> to vector<8x128xbf16>
    %9 = vector.extract_strided_slice %4 {offsets = [0, 64], sizes = [8, 64], strides = [1, 1]} : vector<8x128xbf16> to vector<8x64xbf16>
    %10 = vector.extract_strided_slice %4 {offsets = [0, 0], sizes = [8, 64], strides = [1, 1]} : vector<8x128xbf16> to vector<8x64xbf16>
    %11 = tpu.concatenate %9, %10 in 1 : vector<8x64xbf16>, vector<8x64xbf16> -> vector<8x128xbf16>
    %12 = arith.mulf %4, %6 : vector<8x128xbf16>
    %13 = arith.mulf %11, %8 : vector<8x128xbf16>
    %14 = arith.addf %12, %13 : vector<8x128xbf16>
    %c0_9 = arith.constant 0 : index
    %c0_10 = arith.constant 0 : index
    %c0_11 = arith.constant 0 : index
    %15 = vector.load %arg5[%c0_9, %c0_10, %c0_11] : memref<1x8x128xbf16, #tpu.memory_space<vmem>>, vector<1x8x128xbf16>
    %16 = vector.shape_cast %15 : vector<1x8x128xbf16> to vector<8x128xbf16>
    %c0_12 = arith.constant 0 : index
    %c0_13 = arith.constant 0 : index
    %c0_14 = arith.constant 0 : index
    %17 = vector.load %arg9[%c0_12, %c0_13, %c0_14] : memref<1x8x128xbf16, #tpu.memory_space<vmem>>, vector<1x8x128xbf16>
    %18 = vector.shape_cast %17 : vector<1x8x128xbf16> to vector<8x128xbf16>
    %c0_15 = arith.constant 0 : index
    %c0_16 = arith.constant 0 : index
    %c0_17 = arith.constant 0 : index
    %19 = vector.load %arg10[%c0_15, %c0_16, %c0_17] : memref<1x8x128xbf16, #tpu.memory_space<vmem>>, vector<1x8x128xbf16>
    %20 = vector.shape_cast %19 : vector<1x8x128xbf16> to vector<8x128xbf16>
    %21 = vector.extract_strided_slice %16 {offsets = [0, 64], sizes = [8, 64], strides = [1, 1]} : vector<8x128xbf16> to vector<8x64xbf16>
    %22 = vector.extract_strided_slice %16 {offsets = [0, 0], sizes = [8, 64], strides = [1, 1]} : vector<8x128xbf16> to vector<8x64xbf16>
    %23 = tpu.concatenate %21, %22 in 1 : vector<8x64xbf16>, vector<8x64xbf16> -> vector<8x128xbf16>
    %24 = arith.mulf %16, %18 : vector<8x128xbf16>
    %25 = arith.mulf %23, %20 : vector<8x128xbf16>
    %26 = arith.addf %24, %25 : vector<8x128xbf16>
    %c0_18 = arith.constant 0 : index
    %c0_19 = arith.constant 0 : index
    %c0_20 = arith.constant 0 : index
    %27 = vector.load %arg6[%c0_18, %c0_19, %c0_20] : memref<1x8x128xbf16, #tpu.memory_space<vmem>>, vector<1x8x128xbf16>
    %28 = vector.shape_cast %27 : vector<1x8x128xbf16> to vector<8x128xbf16>
    %cst = arith.constant dense<0.000000e+00> : vector<8x8xf32>
    %29 = tpu.matmul %14, %26, %cst {dimension_numbers = #tpu.dot_dimension_numbers<[1], [1], [0], [0], [0, 0, 1, 0], [], []>} : vector<8x128xbf16>, vector<8x128xbf16>, vector<8x8xf32> -> vector<8x8xf32>
    %c0_21 = arith.constant 0 : index
    %c0_22 = arith.constant 0 : index
    %30 = vector.load %arg11[%c0_21, %c0_22] : memref<8x8xf32, #tpu.memory_space<vmem>>, vector<8x8xf32>
    %31 = arith.addf %29, %30 : vector<8x8xf32>
    %c0_23 = arith.constant 0 : index
    %c0_24 = arith.constant 0 : index
    %32 = vector.load %arg13[%c0_23, %c0_24] : memref<8x1xf32, #tpu.memory_space<vmem>>, vector<8x1xf32>
    %cst_25 = arith.constant dense<0xFF800000> : vector<8xf32>
    %33 = vector.multi_reduction <maximumf>, %31, %cst_25 [1] : vector<8x8xf32> to vector<8xf32>
    %34 = vector.shape_cast %33 : vector<8xf32> to vector<8x1xf32>
    %35 = arith.maximumf %32, %34 : vector<8x1xf32>
    %36 = arith.subf %32, %35 : vector<8x1xf32>
    %37 = math.exp %36 : vector<8x1xf32>
    %38 = vector.broadcast %35 : vector<8x1xf32> to vector<8x8xf32>
    %39 = arith.subf %31, %38 : vector<8x8xf32>
    %40 = math.exp %39 : vector<8x8xf32>
    %c0_26 = arith.constant 0 : index
    %c0_27 = arith.constant 0 : index
    %41 = vector.load %arg14[%c0_26, %c0_27] : memref<8x1xf32, #tpu.memory_space<vmem>>, vector<8x1xf32>
    %42 = arith.mulf %37, %41 : vector<8x1xf32>
    %cst_28 = arith.constant dense<0.000000e+00> : vector<8xf32>
    %43 = vector.multi_reduction <add>, %40, %cst_28 [1] : vector<8x8xf32> to vector<8xf32>
    %44 = vector.shape_cast %43 : vector<8xf32> to vector<8x1xf32>
    %45 = arith.addf %42, %44 : vector<8x1xf32>
    %c0_29 = arith.constant 0 : index
    %c0_30 = arith.constant 0 : index
    %46 = vector.load %arg14[%c0_29, %c0_30] : memref<8x1xf32, #tpu.memory_space<vmem>>, vector<8x1xf32>
    tpu.vector_store %arg14[%c0_29, %c0_30], %45 {strides = array<i32>} : memref<8x1xf32, #tpu.memory_space<vmem>>, vector<8x1xf32>,
    %c0_31 = arith.constant 0 : index
    %c0_32 = arith.constant 0 : index
    %47 = vector.load %arg15[%c0_31, %c0_32] : memref<8x128xf32, #tpu.memory_space<vmem>>, vector<8x128xf32>
    %48 = vector.broadcast %37 : vector<8x1xf32> to vector<8x128xf32>
    %49 = arith.mulf %48, %47 : vector<8x128xf32>
    %50 = arith.truncf %40 : vector<8x8xf32> to vector<8x8xbf16>
    %cst_33 = arith.constant dense<0.000000e+00> : vector<8x128xf32>
    %51 = tpu.matmul %50, %28, %cst_33 {dimension_numbers = #tpu.dot_dimension_numbers<[1], [0], [0], [1], [0, 0, 1, 1], [], []>} : vector<8x8xbf16>, vector<8x128xbf16>, vector<8x128xf32> -> vector<8x128xf32>
    %52 = arith.addf %49, %51 : vector<8x128xf32>
    %c0_34 = arith.constant 0 : index
    %c0_35 = arith.constant 0 : index
    %53 = vector.load %arg15[%c0_34, %c0_35] : memref<8x128xf32, #tpu.memory_space<vmem>>, vector<8x128xf32>
    tpu.vector_store %arg15[%c0_34, %c0_35], %52 {strides = array<i32>} : memref<8x128xf32, #tpu.memory_space<vmem>>, vector<8x128xf32>,
    %c0_36 = arith.constant 0 : index
    %c0_37 = arith.constant 0 : index
    %54 = vector.load %arg13[%c0_36, %c0_37] : memref<8x1xf32, #tpu.memory_space<vmem>>, vector<8x1xf32>
    tpu.vector_store %arg13[%c0_36, %c0_37], %35 {strides = array<i32>} : memref<8x1xf32, #tpu.memory_space<vmem>>, vector<8x1xf32>,
    %c0_i32_38 = arith.constant 0 : i32
    %55 = arith.cmpi eq, %arg3, %c0_i32_38 : i32
    %56 = arith.extui %55 : i1 to i32
    %c0_i32_39 = arith.constant 0 : i32
    %57 = arith.cmpi ne, %56, %c0_i32_39 : i32
    scf.if %57 {
      %c0_40 = arith.constant 0 : index
      %c0_41 = arith.constant 0 : index
      %58 = vector.load %arg15[%c0_40, %c0_41] : memref<8x128xf32, #tpu.memory_space<vmem>>, vector<8x128xf32>
      %c0_42 = arith.constant 0 : index
      %c0_43 = arith.constant 0 : index
      %59 = vector.load %arg14[%c0_42, %c0_43] : memref<8x1xf32, #tpu.memory_space<vmem>>, vector<8x1xf32>
      %cst_44 = arith.constant 1.000000e+00 : f32
      %60 = vector.broadcast %cst_44 : f32 to vector<8x1xf32>
      %61 = arith.divf %60, %59 : vector<8x1xf32>
      %62 = vector.broadcast %61 : vector<8x1xf32> to vector<8x128xf32>
      %63 = arith.mulf %58, %62 : vector<8x128xf32>
      %64 = arith.truncf %63 : vector<8x128xf32> to vector<8x128xbf16>
      %c0_45 = arith.constant 0 : index
      %c0_46 = arith.constant 0 : index
      %c0_47 = arith.constant 0 : index
      %65 = vector.load %arg12[%c0_45, %c0_46, %c0_47] : memref<1x8x128xbf16, #tpu.memory_space<vmem>>, vector<1x8x128xbf16>
      %66 = vector.shape_cast %65 : vector<1x8x128xbf16> to vector<8x128xbf16>
      %67 = vector.shape_cast %64 : vector<8x128xbf16> to vector<1x8x128xbf16>
      tpu.vector_store %arg12[%c0_45, %c0_46, %c0_47], %67 {strides = array<i32>} : memref<1x8x128xbf16, #tpu.memory_space<vmem>>, vector<1x8x128xbf16>,
    } else {
    }
    return
  }
  func.func @transform_0(%arg0: i32, %arg1: i32, %arg2: i32, %arg3: i32) -> (i32, i32, i32) {
    %c0_i32 = arith.constant 0 : i32
    return %arg0, %arg2, %arg1 : i32, i32, i32
  }
  func.func @transform_1(%arg0: i32, %arg1: i32, %arg2: i32, %arg3: i32) -> (i32, i32, i32) {
    %c4_i32 = arith.constant 4 : i32
    %0 = arith.addi %c4_i32, %arg1 : i32
    %c0_i32 = arith.constant 0 : i32
    return %arg0, %arg3, %0 : i32, i32, i32
  }
  func.func @transform_2(%arg0: i32, %arg1: i32, %arg2: i32, %arg3: i32) -> (i32, i32, i32) {
    %c8_i32 = arith.constant 8 : i32
    %0 = arith.addi %c8_i32, %arg1 : i32
    %c0_i32 = arith.constant 0 : i32
    return %arg0, %arg3, %0 : i32, i32, i32
  }
  func.func @transform_3(%arg0: i32, %arg1: i32, %arg2: i32, %arg3: i32) -> (i32, i32, i32) {
    %c0_i32 = arith.constant 0 : i32
    %c0_i32_0 = arith.constant 0 : i32
    return %arg0, %arg2, %c0_i32 : i32, i32, i32
  }
  func.func @transform_4(%arg0: i32, %arg1: i32, %arg2: i32, %arg3: i32) -> (i32, i32, i32) {
    %c0_i32 = arith.constant 0 : i32
    %c0_i32_0 = arith.constant 0 : i32
    return %arg0, %arg2, %c0_i32 : i32, i32, i32
  }
  func.func @transform_5(%arg0: i32, %arg1: i32, %arg2: i32, %arg3: i32) -> (i32, i32, i32) {
    %c0_i32 = arith.constant 0 : i32
    %c0_i32_0 = arith.constant 0 : i32
    return %arg0, %arg3, %c0_i32 : i32, i32, i32
  }
  func.func @transform_6(%arg0: i32, %arg1: i32, %arg2: i32, %arg3: i32) -> (i32, i32, i32) {
    %c0_i32 = arith.constant 0 : i32
    %c0_i32_0 = arith.constant 0 : i32
    return %arg0, %arg3, %c0_i32 : i32, i32, i32
  }
  func.func @transform_7(%arg0: i32, %arg1: i32, %arg2: i32, %arg3: i32) -> (i32, i32) {
    %c0_i32 = arith.constant 0 : i32
    return %arg2, %arg3 : i32, i32
  }
  func.func @transform_8(%arg0: i32, %arg1: i32, %arg2: i32, %arg3: i32) -> (i32, i32, i32) {
    %c0_i32 = arith.constant 0 : i32
    return %arg0, %arg2, %arg1 : i32, i32, i32
  }
}

</mosaic_0001>

<bundles_post_ra>
// kernel: llama_attention_forward.3
= control target key start
LH: loop header
LB: loop body
LE: loop exit
PB: predicated region body
PF: predicated region fallthrough
CT: control target
= control target key end

     0   :  { %s1189_s9 = smov 0   ;;  %s1191_s10 = smov 0   ;;  %s1336_s0 = inlined_call_operand.vmem [shape: bf16[16,512], index: 0, kind: input, shape index: {}]   ;;  %s1337_s1 = inlined_call_operand.vmem [shape: bf16[1536,512], index: 1, kind: input, shape index: {}]   ;;  %s1338_s2 = inlined_call_operand.vmem [shape: bf16[16,1536], index: 2, kind: output, shape index: {}]  }
   0x1   :  { %s1193_s11 = smov 0   ;;  %s1195_s12 = smov 0  }
   0x2   :  { %s1197_s13 = smov 0  }
   0x3 LB: > { %s899_s14 = sadd.s32 4294967295, %s1172_s13   ;;  %s27_s15 = sadd.s32 1, %s1168_s12  ;;  %s1172_s13 = sphi %s1197_s13, %s12_s13   ;;  %s1168_s12 = sphi %s1195_s12, %s1343_s12   ;;  %s1164_s11 = sphi %s1193_s11, %s1342_s11   ;;  %s1160_s10 = sphi %s1191_s10, %s1341_s10   ;;  %s1156_s9 = sphi %s1189_s9, %s1340_s9  }
   0x4   : > { %p29_p0 = scmp.ge.s32.totalorder %s27_s15, 6  ;;  %s96_s16 = sadd.s32 1, %s1160_s10 }
   0x5   : > { %p106_p1 = scmp.ne.s32.totalorder %s1160_s10, %s1156_s9  ;;  %p107_p2 = scmp.eq.s32.totalorder %s899_s14, 5 }
   0x6   : > { %s1345_s15 = smov (%p29_p0, %s27_s15), 0  ;;  %p904_p4 = scmp.ge.s32.totalorder %s1172_s13, 1 }
   0x7   : > { %p1221_p3 = por %p107_p2, %p106_p1  ;;  %s92_s18 = ssub.s32 %s1168_s12, %s1345_s15 }
   0x8   : > { %p161_p5 = scmp.lt.s32.totalorder %s1172_s13, 7  ;;  %p94_p6 = scmp.eq.s32.totalorder %s92_s18, 0 }
   0xa   : > { %p162_p7 = pnand %p904_p4, %p161_p5 }
   0xb   : > { %s1230_s19 = scalar_select %p94_p6, %s1160_s10, %s96_s16  }
   0xc   : > { %165 = sbr.rel (%p162_p7) target bundleno = 379 (0x17b), region = 28  ;;  %s906_s20 = sshll.u32 (!%p162_p7), %s1164_s11, 5  ;;  %v1130_v0 = vld [vmem:[%s1336_s0 + $0x4] ss:$16 sps:$4 sm:$0xff] (!%p162_p7)   ;;  %v1133_v1 = vld [vmem:[%s1336_s0 + $0xc] ss:$16 sps:$4 sm:$0xff] (!%p162_p7)  }
   0xd   : > { %p211_p8 = scmp.lt.s32.totalorder (!%p162_p7), %s906_s20, 191  ;;  %675 = vmatprep.mubr.bf16.mxu1 (!%p162_p7), %v1130_v0  ;;  %718 = vmatprep.mubr.bf16.mxu0 (!%p162_p7), %v1133_v1  ;;  %s194_s5 = sand.u32 (!%p162_p7), 1, %s1156_s9  }
   0xe   : > { %s905_s6 = sshll.u32 (!%p162_p7), %s194_s5, 4 }
   0xf   : > { %s196_s7 = scalar_lea.vmem (!%p162_p7), [#allocation3], %s905_s6 }
  0x13   : > { %s1347_s20 = smov (!%p211_p8, %s906_s20), 191  ;;  %s987_s8 = sshll.u32 (%p1221_p3), %s1164_s11, 3 }
  0x14   : > { %s984_s25 = sshll.u32 %s1347_s20, 4  ;;  %s770_s16 = scalar_lea.vmem (%p1221_p3), %s1338_s2, %s987_s8 }
  0x15   : > { %s1242_s28 = scalar_lea.vmem %s1337_s1, %s984_s25 }
  0x16   : > { %v1032_v2 = vld [vmem:[%s1242_s28 + $0x4] ss:$16 sps:$4 sm:$0xff]   ;;  %v1034_v3 = vld [vmem:[%s1242_s28 + $0xc] ss:$16 sps:$4 sm:$0xff]   ;;  %v1036_v4 = vld [vmem:[%s1242_s28] ss:$16 sps:$4 sm:$0xff]  }
  0x17   : > { %643 = vmatprep.subr.bf16.mxu1 %v1032_v2  ;;  %v1037_v5 = vld [vmem:[%s1242_s28 + $0x8] ss:$16 sps:$4 sm:$0xff]   ;;  %686 = vmatprep.subr.bf16.mxu0 %v1034_v3  ;;  %v1038_v6 = vld [vmem:[%s1242_s28 + $0x24] ss:$16 sps:$4 sm:$0xff]   ;;  %v1040_v7 = vld [vmem:[%s1242_s28 + $0x2c] ss:$16 sps:$4 sm:$0xff]  }
  0x18   : > { %644 = vmatpush1.bf16.xpose.msra.mxu1 %v1036_v4  ;;  %687 = vmatpush1.bf16.xpose.msra.mxu0 %v1037_v5  ;;  %v1042_v8 = vld [vmem:[%s1242_s28 + $0x20] ss:$16 sps:$4 sm:$0xff]   ;;  %v1043_v9 = vld [vmem:[%s1242_s28 + $0x28] ss:$16 sps:$4 sm:$0xff]   ;;  %v1044_v10 = vld [vmem:[%s1242_s28 + $0x44] ss:$16 sps:$4 sm:$0xff]  }
  0x19   : > { %645 = vmatprep.subr.bf16.mxu1 %v1038_v6  ;;  %688 = vmatprep.subr.bf16.mxu0 %v1040_v7  ;;  %v1046_v11 = vld [vmem:[%s1242_s28 + $0x4c] ss:$16 sps:$4 sm:$0xff]   ;;  %v1048_v12 = vld [vmem:[%s1242_s28 + $0x40] ss:$16 sps:$4 sm:$0xff]   ;;  %v1049_v13 = vld [vmem:[%s1242_s28 + $0x48] ss:$16 sps:$4 sm:$0xff]  }
  0x1a   : > { %v1050_v14 = vld [vmem:[%s1242_s28 + $0x64] ss:$16 sps:$4 sm:$0xff]   ;;  %v1052_v15 = vld [vmem:[%s1242_s28 + $0x6c] ss:$16 sps:$4 sm:$0xff]   ;;  %v1054_v16 = vld [vmem:[%s1242_s28 + $0x60] ss:$16 sps:$4 sm:$0xff]  }
  0x1b   : > { %v1055_v17 = vld [vmem:[%s1242_s28 + $0x68] ss:$16 sps:$4 sm:$0xff]   ;;  %v1056_v18 = vld [vmem:[%s1242_s28 + $0x84] ss:$16 sps:$4 sm:$0xff]   ;;  %v1058_v19 = vld [vmem:[%s1242_s28 + $0x8c] ss:$16 sps:$4 sm:$0xff]  }
  0x1c   : > { %v1060_v20 = vld [vmem:[%s1242_s28 + $0x80] ss:$16 sps:$4 sm:$0xff]   ;;  %v1061_v21 = vld [vmem:[%s1242_s28 + $0x88] ss:$16 sps:$4 sm:$0xff]   ;;  %v1062_v22 = vld [vmem:[%s1242_s28 + $0xa4] ss:$16 sps:$4 sm:$0xff]  }
  0x1d   : > { %v1064_v23 = vld [vmem:[%s1242_s28 + $0xac] ss:$16 sps:$4 sm:$0xff]   ;;  %v1066_v24 = vld [vmem:[%s1242_s28 + $0xa0] ss:$16 sps:$4 sm:$0xff]   ;;  %v1067_v25 = vld [vmem:[%s1242_s28 + $0xa8] ss:$16 sps:$4 sm:$0xff]  }
  0x1e   : > { %v1068_v26 = vld [vmem:[%s1242_s28 + $0xc4] ss:$16 sps:$4 sm:$0xff]   ;;  %v1070_v27 = vld [vmem:[%s1242_s28 + $0xcc] ss:$16 sps:$4 sm:$0xff]   ;;  %v1072_v28 = vld [vmem:[%s1242_s28 + $0xc0] ss:$16 sps:$4 sm:$0xff]  }
  0x1f   : > { %v1073_v29 = vld [vmem:[%s1242_s28 + $0xc8] ss:$16 sps:$4 sm:$0xff]   ;;  %v1074_v30 = vld [vmem:[%s1242_s28 + $0xe4] ss:$16 sps:$4 sm:$0xff]   ;;  %v1076_v31 = vld [vmem:[%s1242_s28 + $0xec] ss:$16 sps:$4 sm:$0xff]  }
  0x20   : > { %646 = vmatpush1.bf16.xpose.msra.mxu1 %v1042_v8  ;;  %689 = vmatpush1.bf16.xpose.msra.mxu0 %v1043_v9  ;;  %v1078_v32 = vld [vmem:[%s1242_s28 + $0xe0] ss:$16 sps:$4 sm:$0xff]   ;;  %v1079_v33 = vld [vmem:[%s1242_s28 + $0xe8] ss:$16 sps:$4 sm:$0xff]   ;;  %v1080_v34 = vld [vmem:[%s1242_s28 + $0x104] ss:$16 sps:$4 sm:$0xff]  }
  0x21   : > { %647 = vmatprep.subr.bf16.mxu1 %v1044_v10  ;;  %690 = vmatprep.subr.bf16.mxu0 %v1046_v11  ;;  %v1082_v35 = vld [vmem:[%s1242_s28 + $0x10c] ss:$16 sps:$4 sm:$0xff]   ;;  %v1084_v36 = vld [vmem:[%s1242_s28 + $0x100] ss:$16 sps:$4 sm:$0xff]   ;;  %v1085_v37 = vld [vmem:[%s1242_s28 + $0x108] ss:$16 sps:$4 sm:$0xff]  }
  0x22   : > { %v1086_v38 = vld [vmem:[%s1242_s28 + $0x124] ss:$16 sps:$4 sm:$0xff]   ;;  %v1088_v39 = vld [vmem:[%s1242_s28 + $0x12c] ss:$16 sps:$4 sm:$0xff]   ;;  %v1090_v40 = vld [vmem:[%s1242_s28 + $0x120] ss:$16 sps:$4 sm:$0xff]  }
  0x23   : > { %v1091_v41 = vld [vmem:[%s1242_s28 + $0x128] ss:$16 sps:$4 sm:$0xff]   ;;  %v1092_v42 = vld [vmem:[%s1242_s28 + $0x144] ss:$16 sps:$4 sm:$0xff]   ;;  %v1094_v43 = vld [vmem:[%s1242_s28 + $0x14c] ss:$16 sps:$4 sm:$0xff]  }
  0x24   : > { %v1096_v44 = vld [vmem:[%s1242_s28 + $0x140] ss:$16 sps:$4 sm:$0xff]   ;;  %v1097_v45 = vld [vmem:[%s1242_s28 + $0x148] ss:$16 sps:$4 sm:$0xff]   ;;  %v1098_v46 = vld [vmem:[%s1242_s28 + $0x164] ss:$16 sps:$4 sm:$0xff]  }
  0x25   : > { %v1100_v47 = vld [vmem:[%s1242_s28 + $0x16c] ss:$16 sps:$4 sm:$0xff]   ;;  %v1102_v48 = vld [vmem:[%s1242_s28 + $0x160] ss:$16 sps:$4 sm:$0xff]   ;;  %v1103_v49 = vld [vmem:[%s1242_s28 + $0x168] ss:$16 sps:$4 sm:$0xff]  }
  0x26   : > { %v1104_v50 = vld [vmem:[%s1242_s28 + $0x184] ss:$16 sps:$4 sm:$0xff]   ;;  %v1106_v51 = vld [vmem:[%s1242_s28 + $0x18c] ss:$16 sps:$4 sm:$0xff]   ;;  %v1108_v52 = vld [vmem:[%s1242_s28 + $0x180] ss:$16 sps:$4 sm:$0xff]  }
  0x27   : > { %v1109_v53 = vld [vmem:[%s1242_s28 + $0x188] ss:$16 sps:$4 sm:$0xff]   ;;  %v1110_v54 = vld [vmem:[%s1242_s28 + $0x1a4] ss:$16 sps:$4 sm:$0xff]   ;;  %v1112_v55 = vld [vmem:[%s1242_s28 + $0x1ac] ss:$16 sps:$4 sm:$0xff]  }
  0x28   : > { %648 = vmatpush1.bf16.xpose.msra.mxu1 %v1048_v12  ;;  %691 = vmatpush1.bf16.xpose.msra.mxu0 %v1049_v13  ;;  %v1114_v56 = vld [vmem:[%s1242_s28 + $0x1a0] ss:$16 sps:$4 sm:$0xff]   ;;  %v1115_v57 = vld [vmem:[%s1242_s28 + $0x1a8] ss:$16 sps:$4 sm:$0xff]   ;;  %v1116_v58 = vld [vmem:[%s1242_s28 + $0x1c4] ss:$16 sps:$4 sm:$0xff]  }
  0x29   : > { %649 = vmatprep.subr.bf16.mxu1 %v1050_v14  ;;  %692 = vmatprep.subr.bf16.mxu0 %v1052_v15  ;;  %v1118_v59 = vld [vmem:[%s1242_s28 + $0x1cc] ss:$16 sps:$4 sm:$0xff]   ;;  %v1120_v60 = vld [vmem:[%s1242_s28 + $0x1c0] ss:$16 sps:$4 sm:$0xff]   ;;  %v1121_v61 = vld [vmem:[%s1242_s28 + $0x1c8] ss:$16 sps:$4 sm:$0xff]  }
  0x2a   : > { %v1122_v62 = vld [vmem:[%s1242_s28 + $0x1e4] ss:$16 sps:$4 sm:$0xff]   ;;  %v1124_v63 = vld [vmem:[%s1242_s28 + $0x1ec] ss:$16 sps:$4 sm:$0xff]   ;;  %v1126_v0 = vld [vmem:[%s1242_s28 + $0x1e0] ss:$16 sps:$4 sm:$0xff]  }
  0x2b   : > { %v1127_v1 = vld [vmem:[%s1242_s28 + $0x1e8] ss:$16 sps:$4 sm:$0xff]   ;;  %v1128_v2 = vld [vmem:[%s1336_s0] ss:$16 sps:$4 sm:$0xff]  }
  0x2c   : > { %v1131_v3 = vld [vmem:[%s1336_s0 + $0x8] ss:$16 sps:$4 sm:$0xff]  }
  0x30   : > { %650 = vmatpush1.bf16.xpose.msra.mxu1 %v1054_v16  ;;  %693 = vmatpush1.bf16.xpose.msra.mxu0 %v1055_v17 }
  0x31   : > { %651 = vmatprep.subr.bf16.mxu1 %v1056_v18  ;;  %694 = vmatprep.subr.bf16.mxu0 %v1058_v19 }
  0x38   : > { %652 = vmatpush1.bf16.xpose.msra.mxu1 %v1060_v20  ;;  %695 = vmatpush1.bf16.xpose.msra.mxu0 %v1061_v21 }
  0x39   : > { %653 = vmatprep.subr.bf16.mxu1 %v1062_v22  ;;  %696 = vmatprep.subr.bf16.mxu0 %v1064_v23 }
  0x40   : > { %654 = vmatpush1.bf16.xpose.msra.mxu1 %v1066_v24  ;;  %697 = vmatpush1.bf16.xpose.msra.mxu0 %v1067_v25 }
  0x41   : > { %655 = vmatprep.subr.bf16.mxu1 %v1068_v26  ;;  %698 = vmatprep.subr.bf16.mxu0 %v1070_v27 }
  0x48   : > { %656 = vmatpush1.bf16.xpose.msra.mxu1 %v1072_v28  ;;  %699 = vmatpush1.bf16.xpose.msra.mxu0 %v1073_v29 }
  0x49   : > { %657 = vmatprep.subr.bf16.mxu1 %v1074_v30  ;;  %700 = vmatprep.subr.bf16.mxu0 %v1076_v31 }
  0x50   : > { %658 = vmatpush1.bf16.xpose.msra.mxu1 %v1078_v32  ;;  %701 = vmatpush1.bf16.xpose.msra.mxu0 %v1079_v33 }
  0x51   : > { %659 = vmatprep.subr.bf16.mxu1 %v1080_v34  ;;  %702 = vmatprep.subr.bf16.mxu0 %v1082_v35 }
  0x58   : > { %660 = vmatpush1.bf16.xpose.msra.mxu1 %v1084_v36  ;;  %703 = vmatpush1.bf16.xpose.msra.mxu0 %v1085_v37 }
  0x59   : > { %661 = vmatprep.subr.bf16.mxu1 %v1086_v38  ;;  %704 = vmatprep.subr.bf16.mxu0 %v1088_v39 }
  0x60   : > { %662 = vmatpush1.bf16.xpose.msra.mxu1 %v1090_v40  ;;  %705 = vmatpush1.bf16.xpose.msra.mxu0 %v1091_v41 }
  0x61   : > { %663 = vmatprep.subr.bf16.mxu1 %v1092_v42  ;;  %706 = vmatprep.subr.bf16.mxu0 %v1094_v43 }
  0x68   : > { %664 = vmatpush1.bf16.xpose.msra.mxu1 %v1096_v44  ;;  %707 = vmatpush1.bf16.xpose.msra.mxu0 %v1097_v45 }
  0x69   : > { %665 = vmatprep.subr.bf16.mxu1 %v1098_v46  ;;  %708 = vmatprep.subr.bf16.mxu0 %v1100_v47 }
  0x70   : > { %666 = vmatpush1.bf16.xpose.msra.mxu1 %v1102_v48  ;;  %709 = vmatpush1.bf16.xpose.msra.mxu0 %v1103_v49 }
  0x71   : > { %667 = vmatprep.subr.bf16.mxu1 %v1104_v50  ;;  %710 = vmatprep.subr.bf16.mxu0 %v1106_v51 }
  0x78   : > { %668 = vmatpush1.bf16.xpose.msra.mxu1 %v1108_v52  ;;  %711 = vmatpush1.bf16.xpose.msra.mxu0 %v1109_v53 }
  0x79   : > { %669 = vmatprep.subr.bf16.mxu1 %v1110_v54  ;;  %712 = vmatprep.subr.bf16.mxu0 %v1112_v55 }
  0x80   : > { %670 = vmatpush1.bf16.xpose.msra.mxu1 %v1114_v56  ;;  %713 = vmatpush1.bf16.xpose.msra.mxu0 %v1115_v57 }
  0x81   : > { %671 = vmatprep.subr.bf16.mxu1 %v1116_v58  ;;  %714 = vmatprep.subr.bf16.mxu0 %v1118_v59 }
  0x88   : > { %672 = vmatpush1.bf16.xpose.msra.mxu1 %v1120_v60  ;;  %715 = vmatpush1.bf16.xpose.msra.mxu0 %v1121_v61 }
  0x89   : > { %673 = vmatprep.subr.bf16.mxu1 %v1122_v62  ;;  %716 = vmatprep.subr.bf16.mxu0 %v1124_v63 }
  0x90   : > { %674 = vmatpush1.bf16.xpose.msra.mxu1 %v1126_v0  ;;  %717 = vmatpush1.bf16.xpose.msra.mxu0 %v1127_v1 }
  0x97   : > { %676 = vmatmul.mubr.bf16.vlgmr.msra.gmra.mrb[0].mxu1 %v1128_v2  ;;  %719 = vmatmul.mubr.bf16.vlgmr.msra.gmra.mrb[0].mxu0 %v1131_v3 }
 0x16a   : > { %v677_v4 = vpop.f32.mrb[0].mxu1  ;;  %v720_v5 = vpop.f32.mrb[0].mxu0 }
 0x16b   : > { %v721_v6 = vadd.f32 %v720_v5, %v677_v4  ;;  %v679_v7 = vpop.f32.mrb[1].mxu1  ;;  %v722_v8 = vpop.f32.mrb[1].mxu0 }
 0x16c   : > { %v723_v9 = vadd.f32 %v722_v8, %v679_v7  ;;  %v681_v10 = vpop.f32.mrb[2].mxu1  ;;  %v724_v11 = vpop.f32.mrb[2].mxu0  ;;  %764 = sbr.rel (!%p1221_p3) target bundleno = 379 (0x17b), region = 40 }
 0x16d   : > { %v725_v12 = vadd.f32 %v724_v11, %v681_v10  ;;  %v683_v13 = vpop.f32.mrb[3].mxu1  ;;  %v726_v14 = vpop.f32.mrb[3].mxu0 }
 0x16e   : > { %v985_v15 = vpack.c.bf16 %v723_v9, %v721_v6  ;;  %v727_v16 = vadd.f32 %v726_v14, %v683_v13 }
 0x170   : > { %756 = vst [vmem:[%s196_s7] sm:$0xff] %v985_v15  ;;  %v986_v17 = vpack.c.bf16 %v727_v16, %v725_v12 }
 0x172   : > { %757 = vst [vmem:[%s196_s7 + $0x8] sm:$0xff] %v986_v17 }
 0x177   : > { %v800_v18 = vld [vmem:[%s196_s7] sm:$0xff] }
 0x178   : > { %801 = vst [vmem:[%s770_s16] sm:$0xff] %v800_v18 }
 0x179   : > { %v802_v19 = vld [vmem:[%s196_s7 + $0x8] sm:$0xff] }
 0x17a   : > { %803 = vst [vmem:[%s770_s16 + $0x30] sm:$0xff] %v802_v19 }
 0x17b PF: > { %s12_s13 = sadd.s32 1, %s1172_s13   ;;  %s1340_s9 = smov %s1160_s10 }
 0x17c   : > { %p9_p9 = scmp.ge.s32.totalorder %s12_s13, 8   ;;  %s1341_s10 = smov %s1230_s19 }
 0x17d   : > { %s1342_s11 = smov %s1168_s12  ;;  %s1343_s12 = smov %s1345_s15 }
 0x17e   :  { %11 = sbr.rel (!%p9_p9) target bundleno = 3 (0x3), region = 107 }

// kernel: llama_attention_forward.5
= control target key start
LH: loop header
LB: loop body
LE: loop exit
PB: predicated region body
PF: predicated region fallthrough
CT: control target
= control target key end

     0   :  { %7 = vsyncpa [#allocation4], 0  ;;  %s1426_s0 = inlined_call_operand.vmem [shape: bf16[16,512], index: 0, kind: input, shape index: {}]   ;;  %s1427_s1 = inlined_call_operand.vmem [shape: bf16[512,512], index: 1, kind: input, shape index: {}]   ;;  %s1428_s2 = inlined_call_operand.hbm [shape: bf16[16,512], index: 2, kind: output, shape index: {}]  }
   0x1   :  { %9 = vsyncpa [#allocation4 + $0x1], 0  ;;  %s1234_s9 = smov 0   ;;  %s1236_s10 = smov 0  }
   0x2   :  { %s1238_s11 = smov 0   ;;  %s1240_s12 = smov 0  }
   0x3   :  { %s1242_s13 = smov 0   ;;  %s1244_s14 = smov 0  }
   0x4 LB: > { %s882_s15 = sadd.s32 4294967295, %s1213_s14   ;;  %s883_s16 = sadd.s32 4294967294, %s1213_s14   ;;  %s1213_s14 = sphi %s1244_s14, %s15_s14   ;;  %s1209_s13 = sphi %s1242_s13, %s1435_s13   ;;  %s1205_s12 = sphi %s1240_s12, %s1434_s12   ;;  %s1201_s11 = sphi %s1238_s11, %s1433_s11   ;;  %s1197_s10 = sphi %s1236_s10, %s1432_s10   ;;  %s1193_s9 = sphi %s1234_s9, %s1431_s9  }
   0x5   : > { %s30_s17 = sadd.s32 1, %s1209_s13  ;;  %s99_s18 = sadd.s32 1, %s1201_s11 }
   0x6   : > { %p32_p0 = scmp.ge.s32.totalorder %s30_s17, 2  ;;  %p109_p1 = scmp.ne.s32.totalorder %s1201_s11, %s1197_s10 }
   0x7   : > { %p110_p2 = scmp.eq.s32.totalorder %s882_s15, 1  ;;  %p115_p3 = scmp.ne.s32.totalorder %s1197_s10, %s1193_s9 }
   0x8   : > { %s1437_s17 = smov (%p32_p0, %s30_s17), 0  ;;  %p116_p5 = scmp.eq.s32.totalorder %s883_s16, 1 }
   0x9   : > { %p1274_p4 = por %p110_p2, %p109_p1  ;;  %s95_s20 = ssub.s32 %s1209_s13, %s1437_s17 }
   0xa   : > { %p887_p6 = scmp.ge.s32.totalorder %s1213_s14, 1  ;;  %p97_p7 = scmp.eq.s32.totalorder %s95_s20, 0 }
   0xb   : > { %p1281_p8 = por %p116_p5, %p115_p3  ;;  %p164_p9 = scmp.lt.s32.totalorder %s1213_s14, 3 }
   0xc   : > { %s1287_s22 = scalar_select %p97_p7, %s1201_s11, %s99_s18  }
   0xd   : > { %p165_p10 = pnand %p887_p6, %p164_p9 }
   0xe   : > { %s889_s23 = sshll.u32 (!%p165_p10), %s1205_s12, 5  ;;  %v1131_v0 = vld [vmem:[%s1426_s0 + $0x4] ss:$16 sps:$4 sm:$0xff] (!%p165_p10)   ;;  %v1134_v1 = vld [vmem:[%s1426_s0 + $0xc] ss:$16 sps:$4 sm:$0xff] (!%p165_p10)   ;;  %s198_s8 = sand.u32 (!%p165_p10), 1, %s1197_s10  }
   0xf   : > { %168 = sbr.rel (%p165_p10) target bundleno = 389 (0x185), region = 28  ;;  %p215_p11 = scmp.lt.s32.totalorder (!%p165_p10), %s889_s23, 63  ;;  %679 = vmatprep.mubr.bf16.mxu1 (!%p165_p10), %v1131_v0  ;;  %722 = vmatprep.mubr.bf16.mxu0 (!%p165_p10), %v1134_v1 }
  0x10   : > { %s888_s15 = sshll.u32 (!%p165_p10), %s198_s8, 4  ;;  %s970_s20 = sshll.u32 (!%p165_p10), %s1205_s12, 7 }
  0x11   : > { %s200_s16 = scalar_lea.vmem (!%p165_p10), [#allocation3], %s888_s15  ;;  %s1378_s25 = scalar_lea.hbm (!%p165_p10), %s1428_s2, %s970_s20 }
  0x12   : > { %s779_s18 = sshll.u32 (!%p165_p10), %s200_s16, 4  ;;  %s1380_s26 = scalar_lea.sflag (!%p165_p10), [#allocation4], %s198_s8  ;;  %s1373_s18 = int_to_ptr.vmem [resolvable:$true] %s779_s18 }
  0x13   : > { %s1135_s12 = scalar_lea.vmem (!%p165_p10), %s1373_s18, 256  ;;  %s1215_s27 = smov (!%p165_p10), [#allocation3]  }
  0x14   : > { %p1136_p12 = scmp.ne.s32.totalorder (!%p165_p10), %s1373_s18, %s1135_s12 }
  0x16   : > { %s1439_s23 = smov (!%p215_p11, %s889_s23), 63  ;;  %p1137_p13 = pnand %p1136_p12, %p1274_p4 }
  0x17   : > { %s967_s28 = sshll.u32 %s1439_s23, 4 }
  0x18   : > { %s1299_s3 = scalar_lea.vmem %s1427_s1, %s967_s28  ;;  %p1138_p0 = pneg %p1137_p13 }
  0x19   : > { %v1033_v2 = vld [vmem:[%s1299_s3 + $0x4] ss:$16 sps:$4 sm:$0xff]   ;;  %v1035_v3 = vld [vmem:[%s1299_s3 + $0xc] ss:$16 sps:$4 sm:$0xff]   ;;  %v1037_v4 = vld [vmem:[%s1299_s3] ss:$16 sps:$4 sm:$0xff]  }
  0x1a   : > { %647 = vmatprep.subr.bf16.mxu1 %v1033_v2  ;;  %v1038_v5 = vld [vmem:[%s1299_s3 + $0x8] ss:$16 sps:$4 sm:$0xff]   ;;  %690 = vmatprep.subr.bf16.mxu0 %v1035_v3  ;;  %v1039_v6 = vld [vmem:[%s1299_s3 + $0x24] ss:$16 sps:$4 sm:$0xff]   ;;  %v1041_v7 = vld [vmem:[%s1299_s3 + $0x2c] ss:$16 sps:$4 sm:$0xff]  }
  0x1b   : > { %648 = vmatpush1.bf16.xpose.msra.mxu1 %v1037_v4  ;;  %691 = vmatpush1.bf16.xpose.msra.mxu0 %v1038_v5  ;;  %v1043_v8 = vld [vmem:[%s1299_s3 + $0x20] ss:$16 sps:$4 sm:$0xff]   ;;  %v1044_v9 = vld [vmem:[%s1299_s3 + $0x28] ss:$16 sps:$4 sm:$0xff]   ;;  %v1045_v10 = vld [vmem:[%s1299_s3 + $0x44] ss:$16 sps:$4 sm:$0xff]  }
  0x1c   : > { %649 = vmatprep.subr.bf16.mxu1 %v1039_v6  ;;  %692 = vmatprep.subr.bf16.mxu0 %v1041_v7  ;;  %v1047_v11 = vld [vmem:[%s1299_s3 + $0x4c] ss:$16 sps:$4 sm:$0xff]   ;;  %v1049_v12 = vld [vmem:[%s1299_s3 + $0x40] ss:$16 sps:$4 sm:$0xff]   ;;  %v1050_v13 = vld [vmem:[%s1299_s3 + $0x48] ss:$16 sps:$4 sm:$0xff]  }
  0x1d   : > { %v1051_v14 = vld [vmem:[%s1299_s3 + $0x64] ss:$16 sps:$4 sm:$0xff]   ;;  %v1053_v15 = vld [vmem:[%s1299_s3 + $0x6c] ss:$16 sps:$4 sm:$0xff]   ;;  %v1055_v16 = vld [vmem:[%s1299_s3 + $0x60] ss:$16 sps:$4 sm:$0xff]  }
  0x1e   : > { %v1056_v17 = vld [vmem:[%s1299_s3 + $0x68] ss:$16 sps:$4 sm:$0xff]   ;;  %v1057_v18 = vld [vmem:[%s1299_s3 + $0x84] ss:$16 sps:$4 sm:$0xff]   ;;  %v1059_v19 = vld [vmem:[%s1299_s3 + $0x8c] ss:$16 sps:$4 sm:$0xff]  }
  0x1f   : > { %v1061_v20 = vld [vmem:[%s1299_s3 + $0x80] ss:$16 sps:$4 sm:$0xff]   ;;  %v1062_v21 = vld [vmem:[%s1299_s3 + $0x88] ss:$16 sps:$4 sm:$0xff]   ;;  %v1063_v22 = vld [vmem:[%s1299_s3 + $0xa4] ss:$16 sps:$4 sm:$0xff]  }
  0x20   : > { %v1065_v23 = vld [vmem:[%s1299_s3 + $0xac] ss:$16 sps:$4 sm:$0xff]   ;;  %v1067_v24 = vld [vmem:[%s1299_s3 + $0xa0] ss:$16 sps:$4 sm:$0xff]   ;;  %v1068_v25 = vld [vmem:[%s1299_s3 + $0xa8] ss:$16 sps:$4 sm:$0xff]  }
  0x21   : > { %v1069_v26 = vld [vmem:[%s1299_s3 + $0xc4] ss:$16 sps:$4 sm:$0xff]   ;;  %v1071_v27 = vld [vmem:[%s1299_s3 + $0xcc] ss:$16 sps:$4 sm:$0xff]   ;;  %v1073_v28 = vld [vmem:[%s1299_s3 + $0xc0] ss:$16 sps:$4 sm:$0xff]  }
  0x22   : > { %v1074_v29 = vld [vmem:[%s1299_s3 + $0xc8] ss:$16 sps:$4 sm:$0xff]   ;;  %v1075_v30 = vld [vmem:[%s1299_s3 + $0xe4] ss:$16 sps:$4 sm:$0xff]   ;;  %v1077_v31 = vld [vmem:[%s1299_s3 + $0xec] ss:$16 sps:$4 sm:$0xff]  }
  0x23   : > { %650 = vmatpush1.bf16.xpose.msra.mxu1 %v1043_v8  ;;  %693 = vmatpush1.bf16.xpose.msra.mxu0 %v1044_v9  ;;  %v1079_v32 = vld [vmem:[%s1299_s3 + $0xe0] ss:$16 sps:$4 sm:$0xff]   ;;  %v1080_v33 = vld [vmem:[%s1299_s3 + $0xe8] ss:$16 sps:$4 sm:$0xff]   ;;  %v1081_v34 = vld [vmem:[%s1299_s3 + $0x104] ss:$16 sps:$4 sm:$0xff]  }
  0x24   : > { %651 = vmatprep.subr.bf16.mxu1 %v1045_v10  ;;  %694 = vmatprep.subr.bf16.mxu0 %v1047_v11  ;;  %v1083_v35 = vld [vmem:[%s1299_s3 + $0x10c] ss:$16 sps:$4 sm:$0xff]   ;;  %v1085_v36 = vld [vmem:[%s1299_s3 + $0x100] ss:$16 sps:$4 sm:$0xff]   ;;  %v1086_v37 = vld [vmem:[%s1299_s3 + $0x108] ss:$16 sps:$4 sm:$0xff]  }
  0x25   : > { %v1087_v38 = vld [vmem:[%s1299_s3 + $0x124] ss:$16 sps:$4 sm:$0xff]   ;;  %v1089_v39 = vld [vmem:[%s1299_s3 + $0x12c] ss:$16 sps:$4 sm:$0xff]   ;;  %v1091_v40 = vld [vmem:[%s1299_s3 + $0x120] ss:$16 sps:$4 sm:$0xff]  }
  0x26   : > { %v1092_v41 = vld [vmem:[%s1299_s3 + $0x128] ss:$16 sps:$4 sm:$0xff]   ;;  %v1093_v42 = vld [vmem:[%s1299_s3 + $0x144] ss:$16 sps:$4 sm:$0xff]   ;;  %v1095_v43 = vld [vmem:[%s1299_s3 + $0x14c] ss:$16 sps:$4 sm:$0xff]  }
  0x27   : > { %v1097_v44 = vld [vmem:[%s1299_s3 + $0x140] ss:$16 sps:$4 sm:$0xff]   ;;  %v1098_v45 = vld [vmem:[%s1299_s3 + $0x148] ss:$16 sps:$4 sm:$0xff]   ;;  %v1099_v46 = vld [vmem:[%s1299_s3 + $0x164] ss:$16 sps:$4 sm:$0xff]  }
  0x28   : > { %v1101_v47 = vld [vmem:[%s1299_s3 + $0x16c] ss:$16 sps:$4 sm:$0xff]   ;;  %v1103_v48 = vld [vmem:[%s1299_s3 + $0x160] ss:$16 sps:$4 sm:$0xff]   ;;  %v1104_v49 = vld [vmem:[%s1299_s3 + $0x168] ss:$16 sps:$4 sm:$0xff]  }
  0x29   : > { %v1105_v50 = vld [vmem:[%s1299_s3 + $0x184] ss:$16 sps:$4 sm:$0xff]   ;;  %v1107_v51 = vld [vmem:[%s1299_s3 + $0x18c] ss:$16 sps:$4 sm:$0xff]   ;;  %v1109_v52 = vld [vmem:[%s1299_s3 + $0x180] ss:$16 sps:$4 sm:$0xff]  }
  0x2a   : > { %v1110_v53 = vld [vmem:[%s1299_s3 + $0x188] ss:$16 sps:$4 sm:$0xff]   ;;  %v1111_v54 = vld [vmem:[%s1299_s3 + $0x1a4] ss:$16 sps:$4 sm:$0xff]   ;;  %v1113_v55 = vld [vmem:[%s1299_s3 + $0x1ac] ss:$16 sps:$4 sm:$0xff]  }
  0x2b   : > { %652 = vmatpush1.bf16.xpose.msra.mxu1 %v1049_v12  ;;  %695 = vmatpush1.bf16.xpose.msra.mxu0 %v1050_v13  ;;  %v1115_v56 = vld [vmem:[%s1299_s3 + $0x1a0] ss:$16 sps:$4 sm:$0xff]   ;;  %v1116_v57 = vld [vmem:[%s1299_s3 + $0x1a8] ss:$16 sps:$4 sm:$0xff]   ;;  %v1117_v58 = vld [vmem:[%s1299_s3 + $0x1c4] ss:$16 sps:$4 sm:$0xff]  }
  0x2c   : > { %653 = vmatprep.subr.bf16.mxu1 %v1051_v14  ;;  %696 = vmatprep.subr.bf16.mxu0 %v1053_v15  ;;  %v1119_v59 = vld [vmem:[%s1299_s3 + $0x1cc] ss:$16 sps:$4 sm:$0xff]   ;;  %v1121_v60 = vld [vmem:[%s1299_s3 + $0x1c0] ss:$16 sps:$4 sm:$0xff]   ;;  %v1122_v61 = vld [vmem:[%s1299_s3 + $0x1c8] ss:$16 sps:$4 sm:$0xff]  }
  0x2d   : > { %v1123_v62 = vld [vmem:[%s1299_s3 + $0x1e4] ss:$16 sps:$4 sm:$0xff]   ;;  %v1125_v63 = vld [vmem:[%s1299_s3 + $0x1ec] ss:$16 sps:$4 sm:$0xff]   ;;  %v1127_v0 = vld [vmem:[%s1299_s3 + $0x1e0] ss:$16 sps:$4 sm:$0xff]  }
  0x2e   : > { %v1128_v1 = vld [vmem:[%s1299_s3 + $0x1e8] ss:$16 sps:$4 sm:$0xff]   ;;  %v1129_v2 = vld [vmem:[%s1426_s0] ss:$16 sps:$4 sm:$0xff]   ;;  %s1139_s28 = sshll.u32 %s1215_s27, 4  ;;  %s1140_s28 = int_to_ptr.vmem [resolvable:$false] %s1139_s28 }
  0x2f   : > { %v1132_v3 = vld [vmem:[%s1426_s0 + $0x8] ss:$16 sps:$4 sm:$0xff]   ;;  %s1141_s29 = scalar_lea.vmem %s1140_s28, 512  ;;  %p1142_p1 = scmp.lt.s32.totalorder %s1373_s18, %s1140_s28 }
  0x30   : > { %p1143_p2 = scmp.lt.s32.totalorder %s1141_s29, %s1135_s12 }
  0x32   : > { %p1144_p3 = por %p1143_p2, %p1142_p1 }
  0x33   : > { %654 = vmatpush1.bf16.xpose.msra.mxu1 %v1055_v16  ;;  %697 = vmatpush1.bf16.xpose.msra.mxu0 %v1056_v17 }
  0x34   : > { %655 = vmatprep.subr.bf16.mxu1 %v1057_v18  ;;  %698 = vmatprep.subr.bf16.mxu0 %v1059_v19  ;;  %p1145_p5 = pnand %p1144_p3, %p1138_p0 }
  0x3b   : > { %656 = vmatpush1.bf16.xpose.msra.mxu1 %v1061_v20  ;;  %699 = vmatpush1.bf16.xpose.msra.mxu0 %v1062_v21 }
  0x3c   : > { %657 = vmatprep.subr.bf16.mxu1 %v1063_v22  ;;  %700 = vmatprep.subr.bf16.mxu0 %v1065_v23 }
  0x43   : > { %658 = vmatpush1.bf16.xpose.msra.mxu1 %v1067_v24  ;;  %701 = vmatpush1.bf16.xpose.msra.mxu0 %v1068_v25 }
  0x44   : > { %659 = vmatprep.subr.bf16.mxu1 %v1069_v26  ;;  %702 = vmatprep.subr.bf16.mxu0 %v1071_v27 }
  0x4b   : > { %660 = vmatpush1.bf16.xpose.msra.mxu1 %v1073_v28  ;;  %703 = vmatpush1.bf16.xpose.msra.mxu0 %v1074_v29 }
  0x4c   : > { %661 = vmatprep.subr.bf16.mxu1 %v1075_v30  ;;  %704 = vmatprep.subr.bf16.mxu0 %v1077_v31 }
  0x53   : > { %662 = vmatpush1.bf16.xpose.msra.mxu1 %v1079_v32  ;;  %705 = vmatpush1.bf16.xpose.msra.mxu0 %v1080_v33 }
  0x54   : > { %663 = vmatprep.subr.bf16.mxu1 %v1081_v34  ;;  %706 = vmatprep.subr.bf16.mxu0 %v1083_v35 }
  0x5b   : > { %664 = vmatpush1.bf16.xpose.msra.mxu1 %v1085_v36  ;;  %707 = vmatpush1.bf16.xpose.msra.mxu0 %v1086_v37 }
  0x5c   : > { %665 = vmatprep.subr.bf16.mxu1 %v1087_v38  ;;  %708 = vmatprep.subr.bf16.mxu0 %v1089_v39 }
  0x63   : > { %666 = vmatpush1.bf16.xpose.msra.mxu1 %v1091_v40  ;;  %709 = vmatpush1.bf16.xpose.msra.mxu0 %v1092_v41 }
  0x64   : > { %667 = vmatprep.subr.bf16.mxu1 %v1093_v42  ;;  %710 = vmatprep.subr.bf16.mxu0 %v1095_v43 }
  0x6b   : > { %668 = vmatpush1.bf16.xpose.msra.mxu1 %v1097_v44  ;;  %711 = vmatpush1.bf16.xpose.msra.mxu0 %v1098_v45 }
  0x6c   : > { %669 = vmatprep.subr.bf16.mxu1 %v1099_v46  ;;  %712 = vmatprep.subr.bf16.mxu0 %v1101_v47 }
  0x73   : > { %670 = vmatpush1.bf16.xpose.msra.mxu1 %v1103_v48  ;;  %713 = vmatpush1.bf16.xpose.msra.mxu0 %v1104_v49 }
  0x74   : > { %671 = vmatprep.subr.bf16.mxu1 %v1105_v50  ;;  %714 = vmatprep.subr.bf16.mxu0 %v1107_v51 }
  0x7b   : > { %672 = vmatpush1.bf16.xpose.msra.mxu1 %v1109_v52  ;;  %715 = vmatpush1.bf16.xpose.msra.mxu0 %v1110_v53 }
  0x7c   : > { %673 = vmatprep.subr.bf16.mxu1 %v1111_v54  ;;  %716 = vmatprep.subr.bf16.mxu0 %v1113_v55 }
  0x83   : > { %674 = vmatpush1.bf16.xpose.msra.mxu1 %v1115_v56  ;;  %717 = vmatpush1.bf16.xpose.msra.mxu0 %v1116_v57 }
  0x84   : > { %675 = vmatprep.subr.bf16.mxu1 %v1117_v58  ;;  %718 = vmatprep.subr.bf16.mxu0 %v1119_v59 }
  0x8b   : > { %676 = vmatpush1.bf16.xpose.msra.mxu1 %v1121_v60  ;;  %719 = vmatpush1.bf16.xpose.msra.mxu0 %v1122_v61 }
  0x8c   : > { %677 = vmatprep.subr.bf16.mxu1 %v1123_v62  ;;  %720 = vmatprep.subr.bf16.mxu0 %v1125_v63 }
  0x93   : > { %678 = vmatpush1.bf16.xpose.msra.mxu1 %v1127_v0  ;;  %721 = vmatpush1.bf16.xpose.msra.mxu0 %v1128_v1 }
  0x9a   : > { %680 = vmatmul.mubr.bf16.vlgmr.msra.gmra.mrb[0].mxu1 %v1129_v2  ;;  %723 = vmatmul.mubr.bf16.vlgmr.msra.gmra.mrb[0].mxu0 %v1132_v3 }
 0x16d   : > { %v681_v4 = vpop.f32.mrb[0].mxu1  ;;  %v724_v5 = vpop.f32.mrb[0].mxu0 }
 0x16e   : > { %v725_v6 = vadd.f32 %v724_v5, %v681_v4  ;;  %v683_v7 = vpop.f32.mrb[1].mxu1  ;;  %v726_v8 = vpop.f32.mrb[1].mxu0 }
 0x16f   : > { %v727_v9 = vadd.f32 %v726_v8, %v683_v7  ;;  %v685_v10 = vpop.f32.mrb[2].mxu1  ;;  %v728_v11 = vpop.f32.mrb[2].mxu0 }
 0x170   : > { %v729_v12 = vadd.f32 %v728_v11, %v685_v10  ;;  %v687_v13 = vpop.f32.mrb[3].mxu1  ;;  %v730_v14 = vpop.f32.mrb[3].mxu0 }
 0x171   : > { %v968_v15 = vpack.c.bf16 %v727_v9, %v725_v6  ;;  %v731_v16 = vadd.f32 %v730_v14, %v687_v13 }
 0x173   : > { %760 = vst [vmem:[%s200_s16] sm:$0xff] %v968_v15  ;;  %v969_v17 = vpack.c.bf16 %v731_v16, %v729_v12 }
 0x175   : > { %761 = vst [vmem:[%s200_s16 + $0x8] sm:$0xff] %v969_v17 }
 0x176   : > { %1148 = shalt.err (!%p1145_p5)
}
 0x177   : > { %s1149_s30 = scalar_lea.hbm %s1378_s25, 256  ;;  %s1153_s5 = scalar_lea.hbm %s1428_s2, 512 }
 0x178   : > { %p1150_p6 = scmp.ne.s32.totalorder %s1378_s25, %s1149_s30  ;;  %p1154_p10 = scmp.lt.u32.totalorder %s1378_s25, %s1428_s2 }
 0x179   : > { %p1155_p11 = scmp.lt.u32.totalorder %s1153_s5, %s1149_s30  ;;  %p1157_p13 = scmp.lt.u32.totalorder %s1149_s30, %s1378_s25 }
 0x17a   : > { %p1151_p7 = pnand %p1150_p6, %p1274_p4 }
 0x17b   : > { %p1156_p12 = por %p1155_p11, %p1154_p10 }
 0x17c   : > { %p1152_p9 = pneg %p1151_p7 }
 0x17d   : > { %p1158_p0 = por %p1157_p13, %p1156_p12 }
 0x17f   : > { %p1159_p1 = pnand %p1158_p0, %p1152_p9 }
 0x181   : > { %1162 = shalt.err (!%p1159_p1)
}
 0x182   : > { %s1216_s8 = smov 128   ;;  %s1217_s15 = smov 256  }
 0x183   : > { %s1218_s16 = smov 8  }
 0x184   : > { %975 = dma.vmem_to_hbm [thread:$0]  (%p1274_p4), %s1373_s18, 256, %s1378_s25, %s1380_s26, %s1216_s8, %s1217_s15, %s1218_s16  }
 0x185 PF: > { %p981_p2 = scmp.ge.s32.totalorder %s1213_s14, 2  ;;  %s794_s20 = sand.u32 1, %s1193_s9  }
 0x186   : > { %s795_s23 = scalar_lea.sflag [#allocation4], %s794_s20 }
 0x187   : > { %p978_p3 = pnand %p981_p2, %p1281_p8 }
 0x189   : > { %1188 = dma.done.wait (!%p978_p3), %s795_s23, 256  }
 0x18a   : > { %1190 = vsyncadd (!%p978_p3), %s795_s23, 4294967040  ;;  %s15_s14 = sadd.s32 1, %s1213_s14   ;;  %s1431_s9 = smov %s1197_s10 }
 0x18b   : > { %p12_p5 = scmp.ge.s32.totalorder %s15_s14, 4   ;;  %s1432_s10 = smov %s1201_s11 }
 0x18c   : > { %s1433_s11 = smov %s1287_s22  ;;  %s1434_s12 = smov %s1209_s13 }
 0x18d   : > { %s1435_s13 = smov %s1437_s17  ;;  %14 = sbr.rel (!%p12_p5) target bundleno = 4 (0x4), region = 74 }
 0x194   :  { %800 = vsyncpa [#allocation4], 1 }
 0x195   :  { %802 = vsyncpa [#allocation4 + $0x1], 1 }

// kernel: llama_attention_forward.4
= control target key start
LH: loop header
LB: loop body
LE: loop exit
PB: predicated region body
PF: predicated region fallthrough
CT: control target
= control target key end

     0   :  { %s1217_s27 = smov 0   ;;  %s1219_s28 = smov 0   ;;  %s1316_s0 = inlined_call_operand.vmem [shape: bf16[2,8,1536], index: 0, kind: input, shape index: {}, may-alias: {0,1,2}]   ;;  %s1317_s1 = inlined_call_operand.vmem [shape: bf16[2,8,1536], index: 1, kind: input, shape index: {}, may-alias: {0,1,2}]   ;;  %s1318_s2 = inlined_call_operand.vmem [shape: bf16[2,8,1536], index: 2, kind: input, shape index: {}, may-alias: {0,1,2}]   ;;  %s1319_s3 = inlined_call_operand.vmem [shape: bf16[2,8,128], index: 3, kind: input, shape index: {}]   ;;  %s1320_s4 = inlined_call_operand.vmem [shape: bf16[2,8,128], index: 4, kind: input, shape index: {}]   ;;  %s1321_s5 = inlined_call_operand.vmem [shape: bf16[2,8,128], index: 5, kind: input, shape index: {}]   ;;  %s1322_s6 = inlined_call_operand.vmem [shape: bf16[2,8,128], index: 6, kind: input, shape index: {}]   ;;  %s1323_s7 = inlined_call_operand.vmem [shape: f32[8,8], index: 7, kind: input, shape index: {}]   ;;  %s1324_s8 = inlined_call_operand.vmem [shape: bf16[2,8,512], index: 8, kind: output, shape index: {}]  }
   0x1   :  { %s1221_s29 = smov 0   ;;  %s1223_s30 = smov 0  }
   0x2   :  { %s1225_s9 = smov 0  }
   0x3 LB: > { %s40_s10 = sadd.s32 1, %s1157_s29  ;;  %s44_s11 = sadd.s32 1, %s1161_s30  ;;  %s1165_s9 = sphi %s1225_s9, %s18_s9   ;;  %s1161_s30 = sphi %s1223_s30, %s1328_s30   ;;  %s1157_s29 = sphi %s1221_s29, %s1327_s29   ;;  %s1153_s28 = sphi %s1219_s28, %s1326_s28   ;;  %s1149_s27 = sphi %s1217_s27, %s1325_s27  }
   0x4   : > { %p42_p0 = scmp.ge.s32.totalorder %s40_s10, 4  ;;  %p1040_p1 = scmp.ge.s32.totalorder %s1165_s9, 1 }
   0x5   : > { %p423_p2 = scmp.lt.s32.totalorder %s1165_s9, 9 }
   0x6   : > { %s1330_s10 = smov (%p42_p0, %s40_s10), 0  ;;  %s1332_s11 = smov (!%p42_p0, %s44_s11), %s1161_s30 }
   0x7   : > { %p424_p3 = pnand %p1040_p1, %p423_p2  ;;  %p46_p4 = scmp.ge.s32.totalorder %s1332_s11, 2 }
   0x8   : > { %p532_p5 = scmp.lt.s32.totalorder (!%p424_p3), %s1153_s28, 1  ;;  %s544_s12 = sadd.s32 (!%p424_p3), 4, %s1149_s27  ;;  %v1167_v0 = vmov (!%p424_p3), 0.0   ;;  %vm1168_vm0 = vmmov (!%p424_p3), 0   ;;  %vm624_vm1 = vcmask (!%p424_p3), 7168   ;;  %v1170_v17 = vmov (!%p424_p3), -inf  }
   0x9   : > { %s1334_s11 = smov (%p46_p4, %s1332_s11), 0  ;;  %427 = sbr.rel (%p424_p3) target bundleno = 950 (0x3b6), region = 52 }
   0xa   : > { %p549_p6 = scmp.lt.s32.totalorder (!%p424_p3), %s544_s12, 11  ;;  %1059 = vmatprep.subr.bf16.mxu0 (!%p424_p3), %v1167_v0  ;;  %1065 = vmatprep.subr.bf16.mxu1 (!%p424_p3), %v1167_v0  ;;  %p536_p7 = scmp.lt.s32.totalorder (!%p424_p3), %s1149_s27, 11  ;;  %625 = vst.msk [vmem:[#allocation2] sm:$0xff] (!%p424_p3), %vm624_vm1, %v1170_v17  ;;  %626 = vst.msk [vmem:[#allocation3] sm:$0xff] (!%p424_p3), %vm624_vm1, %v1167_v0  ;;  %v655_v18 = vld [vmem:[%s1323_s7] sm:$0xff] (!%p424_p3)  ;;  %vm697_vm2 = vcmask (!%p424_p3), 64512  }
   0xb   : > { %1061 = vmatprep.mubr.msk.bf16.mxu0 (!%p424_p3), %vm1168_vm0, %v1167_v0  ;;  %1067 = vmatprep.mubr.msk.bf16.mxu1 (!%p424_p3), %vm1168_vm0, %v1167_v0  ;;  %s1169_s21 = smov (!%p424_p3), 64   ;;  %v1171_v25 = vmov (!%p424_p3), 0   ;;  %vm732_vm3 = vcmask (!%p424_p3), 1043456   ;;  %p611_p9 = scmp.lt.s32.totalorder (!%p424_p3), %s1149_s27, 3 }
   0xc   : > { %1117 = vset.pattern.permute.xlu1 (!%p424_p3), %v1171_v25  ;;  %1118 = vset.pattern.permute.xlu0 (!%p424_p3), %v1171_v25 }
  0x10   : > { %s1336_s28 = smov (!%p532_p5, %s1153_s28), 1  ;;  %s1338_s12 = smov (!%p549_p6, %s544_s12), 11 }
  0x11   : > { %s1250_s13 = smul.u32 12, %s1336_s28  ;;  %s1262_s26 = sshll.u32 %s1336_s28, 2  ;;  %v696_v26 = vld [vmem:[#allocation2] sm:$0xff]  ;;  %v713_v40 = vld [vmem:[#allocation3] sm:$0xff] }
  0x12   : > { %s537_s19 = scalar_select %p536_p7, %s1149_s27, 11 }
  0x13   : > { %s554_s14 = sadd.s32 %s1250_s13, %s1338_s12  ;;  %s585_s23 = scalar_lea.vmem %s1320_s4, %s1262_s26 }
  0x14   : > { %s1042_s15 = sshll.u32 %s554_s14, 2  ;;  %s541_s20 = sadd.s32 %s1250_s13, %s537_s19  ;;  %v630_v12 = vld [vmem:[%s585_s23] sm:$0xf] }
  0x15   : > { %s556_s18 = scalar_lea.vmem %s1317_s1, %s1042_s15  ;;  %s1041_s22 = sshll.u32 %s541_s20, 2 }
  0x16   : > { %v641_v1 = vld [vmem:[%s556_s18] sm:$0xf]  ;;  %s543_s25 = scalar_lea.vmem %s1316_s0, %s1041_s22  ;;  %s592_s15 = scalar_lea.vmem %s1321_s5, %s1262_s26 }
  0x17   : > { %v1051_v2 = vcombine.low %v641_v1, %v641_v1  ;;  %v628_v3 = vld [vmem:[%s543_s25] sm:$0xf]  ;;  %s599_s18 = scalar_lea.vmem %s1322_s6, %s1262_s26  ;;  %s558_s12 = sadd.s32 8, %s1149_s27 }
  0x18   : > { %v1050_v4 = vcombine.low %v628_v3, %v628_v3  ;;  %v642_v5 = vld [vmem:[%s592_s15] sm:$0xf]  ;;  %p563_p8 = scmp.lt.s32.totalorder %s558_s12, 11  ;;  %s1342_s27 = smov (!%p611_p9, %s1149_s27), 3 }
  0x19   : > { %647 = vrot.lane.b32.xlu0 %v1051_v2, %s1169_s21  ;;  %v643_v6 = vld [vmem:[%s599_s18] sm:$0xf]  ;;  %v651_v7 = vmul.bf16 %v642_v5, %v641_v1 }
  0x1a   : > { %s1340_s12 = smov (!%p563_p8, %s558_s12), 11 }
  0x1b   : > { %s568_s14 = sadd.s32 %s1250_s13, %s1340_s12  ;;  %s616_s13 = sadd.s32 %s1262_s26, %s1342_s27 }
  0x1c   : > { %s1043_s15 = sshll.u32 %s568_s14, 2  ;;  %s1049_s19 = sshll.u32 %s616_s13, 2 }
  0x1d   : > { %634 = vrot.lane.b32.xlu0 %v1050_v4, %s1169_s21  ;;  %s578_s21 = scalar_lea.vmem %s1319_s3, %s1262_s26  ;;  %s570_s18 = scalar_lea.vmem %s1318_s2, %s1043_s15 }
  0x1e   : > { %v629_v10 = vld [vmem:[%s578_s21] sm:$0xf]  ;;  %s618_s28 = scalar_lea.vmem %s1324_s8, %s1049_s19 }
  0x1f   : > { %v638_v13 = vmul.bf16 %v629_v10, %v628_v3  ;;  %v654_v31 = vld [vmem:[%s570_s18] sm:$0xf] }
  0x20   : > { %v734_v32 = vsel %vm732_vm3, %v654_v31, 0 }
  0x21   : > { %1066 = vmatpush3.bf16.msra.mxu1 %v734_v32 }
  0x8b   : > { %v648_v8 = vpop.permute.xlu0 %647 }
  0x8c   : > { %v652_v9 = vmul.bf16 %v648_v8, %v643_v6 }
  0x8e   : > { %v653_v11 = vadd.bf16 %v652_v9, %v651_v7 }
  0x8f   : > { %v635_v14 = vpop.permute.xlu0 %634 }
  0x90   : > { %1060 = vmatpush3.bf16.xpose.msra.mxu0 %v653_v11  ;;  %v639_v15 = vmul.bf16 %v635_v14, %v630_v12 }
  0x92   : > { %v640_v16 = vadd.bf16 %v639_v15, %v638_v13 }
  0x97   : > { %1062 = vmatmul.mubr.bf16.vlgmr.msra.gmra.mrb[0].mxu0 %v640_v16 }
 0x16a   : > { %v690_v19 = vpop.f32.mrb[0].mxu0 }
 0x16b   : > { %v691_v20 = vadd.f32 %v690_v19, %v655_v18  ;;  %v1063_v21 = vpop.f32.mrb[1].mxu0 }
 0x16c   : > { %v693_v22 = vpop.f32.mrb[2].mxu0 }
 0x16d   : > { %v1064_v23 = vpop.f32.mrb[3].mxu0  ;;  %v698_v24 = vsel %vm697_vm2, %v691_v20, -inf }
 0x16e   : > { %699 = vmax.xlane.f32.xlu1 %v698_v24 }
 0x1fb   : > { %v700_v27 = vpop.xlane.xlu1 %699 }
 0x1fc   : > { %v701_v28 = vmax.f32 %v696_v26, %v700_v27 }
 0x1fe   : > { %v702_v29 = vsub.f32 %v696_v26, %v701_v28  ;;  %778 = vst.msk [vmem:[#allocation2] sm:$0xff] %vm624_vm1, %v701_v28  ;;  %707 = vperm.xlu1 %1117, %v701_v28  }
 0x200   : > { %v703_v30 = vmul.f32 1.442695, %v702_v29 }
 0x202   : > { %1121 = vpow2.f32 %v703_v30 }
 0x20c   : > { %v1122_v33 = vpop.eup %1121 }
 0x20d   : > { %724 = vperm.xlu1 %1117, %v1122_v33   ;;  %v714_v41 = vmul.f32 %v1122_v33, %v713_v40 }
 0x27d   : > { %v708_v34 = vpop.permute.xlu1 %707 }
 0x27e   : > { %v710_v35 = vsub.f32 %v691_v20, %v708_v34 }
 0x280   : > { %v711_v36 = vmul.f32 1.442695, %v710_v35 }
 0x282   : > { %1123 = vpow2.f32 %v711_v36 }
 0x28c   : > { %v1124_v37 = vpop.eup %1123  ;;  %v725_v50 = vpop.permute.xlu1 %724 }
 0x28d   : > { %v715_v38 = vsel %vm697_vm2, %v1124_v37, 0.0  ;;  %v728_v39 = vpack.c.bf16 %v1124_v37, %v1124_v37  ;;  %v727_v51 = vmul.f32 0.0, %v725_v50 }
 0x28e   : > { %716 = vadd.xlane.f32.xlu0 %v715_v38 }
 0x28f   : > { %1068 = vmatmul.mubr.msk.bf16.vlgmr.msra.gmra.mrb[0].mxu1 %vm697_vm2, %v728_v39 }
 0x31b   : > { %v717_v42 = vpop.xlane.xlu0 %716 }
 0x31c   : > { %v718_v43 = vadd.f32 %v717_v42, %v714_v41 }
 0x31e   : > { %720 = vst.msk [vmem:[#allocation3] sm:$0xff] %vm624_vm1, %v718_v43 }
 0x325   : > { %v783_v44 = vld [vmem:[#allocation3] sm:$0xff] }
 0x326   : > { %1125 = vrcp.f32 %v783_v44 }
 0x330   : > { %v1126_v45 = vpop.eup %1125 }
 0x331   : > { %788 = vperm.xlu1 %1117, %v1126_v45  }
 0x362   : > { %v770_v46 = vpop.f32.mrb[0].mxu1 }
 0x363   : > { %v1069_v47 = vpop.f32.mrb[1].mxu1  ;;  %v776_v52 = vadd.f32 %v770_v46, %v727_v51 }
 0x364   : > { %v773_v48 = vpop.f32.mrb[2].mxu1 }
 0x365   : > { %v1070_v49 = vpop.f32.mrb[3].mxu1 }
 0x3b0   : > { %v789_v53 = vpop.permute.xlu1 %788 }
 0x3b1   : > { %v791_v54 = vmul.f32 %v789_v53, %v776_v52 }
 0x3b3   : > { %v792_v55 = vpack.c.bf16 %v791_v54, %v791_v54 }
 0x3b5   : > { %793 = vst [vmem:[%s618_s28] sm:$0xf] %v792_v55 }
 0x3b6 PF: > { %s18_s9 = sadd.s32 1, %s1165_s9   ;;  %s1325_s27 = smov %s1157_s29 }
 0x3b7   : > { %p15_p10 = scmp.ge.s32.totalorder %s18_s9, 10   ;;  %s1326_s28 = smov %s1161_s30 }
 0x3b8   : > { %s1327_s29 = smov %s1330_s10  ;;  %s1328_s30 = smov %s1334_s11 }
 0x3b9   :  { %17 = sbr.rel (!%p15_p10) target bundleno = 3 (0x3), region = 111 }

</bundles_post_ra>
